<compile_context>
chip_gen: v6e
topology: v6e:2x2x1
jax: 0.10.0
libtpu: 0.0.40
codegen_flags: <defaults>
</compile_context>

<pallas_src>
import functools

import jax
import jax.numpy as jnp
from jax.experimental import pallas as pl
from jax.experimental.pallas import tpu as pltpu

NOISE_SCALE = 0.5


# ---------------------------------------------------------------- helpers
def _round_up(x, m):
    return ((x + m - 1) // m) * m


def _mxu_dtype(x_dtype, use_bf16_mxu):
    if use_bf16_mxu or jnp.dtype(x_dtype) == jnp.dtype(jnp.bfloat16):
        return jnp.bfloat16
    return jnp.float32


@functools.lru_cache(maxsize=1)
def _vmem_budget_bytes():
    """~3/4 of physical VMEM: ~48 MiB on v7x (64 MiB), ~96 MiB on v5e/v6e (128 MiB)."""
    physical = 64 << 20  # conservative fallback (v7x-sized)
    try:
        info = pltpu.get_tpu_info()
        physical = int(getattr(info, "vmem_capacity_bytes", physical)) or physical
    except Exception:
        pass
    return (physical * 3) // 4


def _pick_tb(B, sublane):
    """Batch tile: whole (sublane-aligned) batch if small, else the largest of
    512/256/128 that divides the aligned batch; falls back to 512 (+pad)."""
    b_al = _round_up(B, sublane)
    if b_al <= 512:
        return b_al
    for tb in (512, 256, 128):
        if b_al % tb == 0:
            return tb
    return 512


def _pick_tc(tb, C_pad, K_pad, n_out, x_item, w_item, budget):
    """Largest feature tile (multiple of 128, divides C_pad) whose
    double-buffered pipelined footprint fits the VMEM budget."""
    target = (budget * 7) // 8            # headroom for Mosaic internal scratch
    coeff_fp = 2 * tb * K_pad * w_item    # scaled-coeff tile, double buffered

    def footprint(tc):
        return (coeff_fp
                + 2 * K_pad * tc * w_item                 # eig_vecs.T tile
                + 2 * (1 + n_out) * tb * tc * x_item)     # x tile + output tile(s)

    m = C_pad // 128
    for d in range(m, 0, -1):
        if m % d == 0:
            tc = d * 128
            if footprint(tc) <= target:
                return tc, True
    return 128, footprint(128) <= target


def _plan(B, C, x_dtype, use_bf16_mxu, n_out):
    """Static tiling plan (shapes/dtypes only, so it is valid at trace time)."""
    mxu_dtype = _mxu_dtype(x_dtype, use_bf16_mxu)
    x_item = jnp.dtype(x_dtype).itemsize
    w_item = jnp.dtype(mxu_dtype).itemsize
    sublane = 16 if (w_item == 2 or x_item == 2) else 8

    k = min(B, C)
    K_pad = _round_up(k, 128)
    C_pad = _round_up(C, 128)
    budget = _vmem_budget_bytes()

    tb = _pick_tb(B, sublane)
    tc, ok = _pick_tc(tb, C_pad, K_pad, n_out, x_item, w_item, budget)
    # If even a 128-wide feature tile does not fit, shrink the batch tile — but
    # never below 128 rows (keeps the MXU M dim full); past that we let the
    # compiler complain loudly instead of silently degrading to tiny tiles.
    while (not ok) and tb // 2 >= 128 and (tb // 2) % sublane == 0:
        tb //= 2
        tc, ok = _pick_tc(tb, C_pad, K_pad, n_out, x_item, w_item, budget)

    B_pad = _round_up(B, tb)
    return dict(k=k, K_pad=K_pad, C_pad=C_pad, tb=tb, tc=tc, B_pad=B_pad,
                grid=(B_pad // tb, C_pad // tc), mxu_dtype=mxu_dtype,
                vmem_limit=int(budget))


# ---------------------------------------------------------------- kernels
def _make_kernel(emit_noise):
    """Noise-apply kernel.

    Per grid step (i, j):
      x_ref      : (tb, tc)      input tile
      coeff_ref  : (tb, K_pad)   scale-folded gaussian coefficients (mxu dtype)
      vecs_t_ref : (K_pad, tc)   eig_vecs.T tile, zero-padded         (mxu dtype)
      noisy_ref  : (tb, tc)
      noise_ref  : (tb, tc)      (only when emit_noise)
    """
    if emit_noise:
        def kernel(x_ref, coeff_ref, vecs_t_ref, noisy_ref, noise_ref):
            pca = jnp.dot(coeff_ref[...], vecs_t_ref[...],          # MXU
                          preferred_element_type=jnp.float32)
            noisy_ref[...] = (x_ref[...].astype(jnp.float32) + pca
                              ).astype(noisy_ref.dtype)             # VPU, single cast
            noise_ref[...] = pca.astype(noise_ref.dtype)
    else:
        def kernel(x_ref, coeff_ref, vecs_t_ref, noisy_ref):
            pca = jnp.dot(coeff_ref[...], vecs_t_ref[...],
                          preferred_element_type=jnp.float32)
            noisy_ref[...] = (x_ref[...].astype(jnp.float32) + pca
                              ).astype(noisy_ref.dtype)
    return kernel


def _noise_apply(x, coeff, vecs_t, *, emit_noise, plan):
    """noisy = x + coeff @ vecs_t, tiled over (batch, feature)."""
    B_pad, C_pad = x.shape
    K_pad = coeff.shape[1]
    tb, tc = plan["tb"], plan["tc"]
    nb, nc = plan["grid"]
    n_out = 2 if emit_noise else 1
    x_item = jnp.dtype(x.dtype).itemsize
    w_item = jnp.dtype(vecs_t.dtype).itemsize

    in_specs = [
        pl.BlockSpec((tb, tc), lambda i, j: (i, j)),      # x tile
        pl.BlockSpec((tb, K_pad), lambda i, j: (i, 0)),   # coeff (held across j)
        pl.BlockSpec((K_pad, tc), lambda i, j: (0, j)),   # eig_vecs.T tile
    ]
    out_spec = pl.BlockSpec((tb, tc), lambda i, j: (i, j))
    if emit_noise:
        out_specs = (out_spec, pl.BlockSpec((tb, tc), lambda i, j: (i, j)))
        out_shapes = (jax.ShapeDtypeStruct((B_pad, C_pad), x.dtype),
                      jax.ShapeDtypeStruct((B_pad, C_pad), x.dtype))
    else:
        out_specs = out_spec
        out_shapes = jax.ShapeDtypeStruct((B_pad, C_pad), x.dtype)

    # advisory cost at the *padded* shapes actually streamed
    vecs_reads = 1 if nc == 1 else nb
    cost = pl.CostEstimate(
        flops=2 * B_pad * K_pad * C_pad,
        transcendentals=0,
        bytes_accessed=(B_pad * C_pad * x_item                 # x read
                        + B_pad * K_pad * w_item               # coeff read
                        + vecs_reads * K_pad * C_pad * w_item  # weight read(s)
                        + n_out * B_pad * C_pad * x_item))     # writes

    return pl.pallas_call(
        _make_kernel(emit_noise),
        out_shape=out_shapes,
        grid=(nb, nc),
        in_specs=in_specs,
        out_specs=out_specs,
        compiler_params=pltpu.CompilerParams(
            dimension_semantics=("parallel", "parallel"),
            vmem_limit_bytes=plan["vmem_limit"],
        ),
        cost_estimate=cost,
    )(x, coeff, vecs_t)


# ---------------------------------------------------------------- wrapper
@functools.partial(jax.jit,
                   static_argnames=("noise_scale", "return_patches", "use_bf16_mxu"))
def svd_pca_noise(x, key, noise_scale=NOISE_SCALE, return_patches=False,
                  use_bf16_mxu=True):
    """JAX/Pallas equivalent of SVDPCANoise.forward(x)."""
    B, C = x.shape
    n_out = 2 if return_patches else 1
    p = _plan(B, C, x.dtype, use_bf16_mxu, n_out)
    k, K_pad, C_pad, B_pad = p["k"], p["K_pad"], p["C_pad"], p["B_pad"]
    mxu_dtype = p["mxu_dtype"]

    # --- mean-centering + PCA via SVD: plain JAX/XLA, f32 ---
    # TODO(synk): SVD/eigendecomposition stays in XLA (no Pallas equivalent).
    xf = x.astype(jnp.float32)
    centered = xf - jnp.mean(xf, axis=0, keepdims=True)
    _, s, vt = jnp.linalg.svd(centered, full_matrices=False)     # vt: (k, C)
    eig_vals = (s * s) / (B - 1 + 1e-6)                          # already descending
    valid_mask = (eig_vals > 1e-6).astype(jnp.float32)
    scale_k = jnp.sqrt(eig_vals) * noise_scale * valid_mask      # (k,)

    # zero padding of the scale kills padded + invalid components exactly
    scale_pad = jnp.zeros((K_pad,), jnp.float32).at[:k].set(scale_k)

    # eig_vecs.T == vt, zero-padded to (K_pad, C_pad), MXU dtype
    vecs_t = jnp.zeros((K_pad, C_pad), jnp.float32).at[:k, :C].set(vt).astype(mxu_dtype)

    # gaussian coefficients drawn directly at the padded shape (no pad copy);
    # the per-component scale is folded in here (fuses into the RNG kernel)
    # and the result cast to the MXU dtype -> halves the coeff HBM stream.
    coeff = jax.random.normal(key, (B_pad, K_pad), dtype=jnp.float32)
    coeff_scaled = (coeff * scale_pad[None, :]).astype(mxu_dtype)

    # x is only padded (and the output only sliced) when not tile-aligned
    aligned = (B_pad == B) and (C_pad == C)
    x_in = x if aligned else jnp.zeros((B_pad, C_pad), x.dtype).at[:B, :C].set(x)

    outs = _noise_apply(x_in, coeff_scaled, vecs_t,
                        emit_noise=return_patches, plan=p)

    if return_patches:
        noisy, noise = outs
        if not aligned:
            noisy, noise = noisy[:B, :C], noise[:B, :C]
        return noisy, noise
    noisy = outs
    return noisy if aligned else noisy[:B, :C]


# ---------------------------------------------------------------- reference
def _reference(x, key, noise_scale=NOISE_SCALE, use_bf16_mxu=True, exact_math=False):
    """Pure-JAX replica of svd_pca_noise (testing only). `use_bf16_mxu` must
    match the kernel call so the RNG draw shape (hence the coefficients)
    matches; `exact_math=True` keeps the matmul in full f32 precision."""
    B, C = x.shape
    k = min(B, C)
    xf = x.astype(jnp.float32)
    centered = xf - xf.mean(axis=0, keepdims=True)
    _, s, vt = jnp.linalg.svd(centered, full_matrices=False)
    ev = (s * s) / (B - 1 + 1e-6)
    scale = jnp.sqrt(ev) * noise_scale * (ev > 1e-6).astype(jnp.float32)
    p = _plan(B, C, x.dtype, use_bf16_mxu, 1)
    coeff = jax.random.normal(key, (p["B_pad"], p["K_pad"]), dtype=jnp.float32)[:B, :k]
    scaled = coeff * scale[None, :]
    if exact_math:
        noise = jnp.dot(scaled, vt, precision=jax.lax.Precision.HIGHEST)
    else:
        mxu = p["mxu_dtype"]
        noise = jnp.dot(scaled.astype(mxu), vt.astype(mxu),
                        preferred_element_type=jnp.float32)
    return xf + noise, noise


# ---------------------------------------------------------------- main
if __name__ == "__main__":
    key = jax.random.PRNGKey(0)
    kx, kn = jax.random.split(key)

    B, C = 16, 32
    x = jax.random.normal(kx, (B, C), dtype=jnp.float32)

    # kernel paths (default: bf16 MXU operands, f32 accumulation)
    noisy, pca_noise = svd_pca_noise(x, kn, return_patches=True)
    noisy = jax.block_until_ready(noisy)
    pca_noise = jax.block_until_ready(pca_noise)
    noisy_only = jax.block_until_ready(svd_pca_noise(x, kn))
    # f32-operand variant (precision-gated path)
    noisy_f32 = jax.block_until_ready(svd_pca_noise(x, kn, use_bf16_mxu=False))

    # references
    noisy_ref_bf, noise_ref_bf = _reference(x, kn, use_bf16_mxu=True)           # matched precision
    noisy_ref, noise_ref = _reference(x, kn, use_bf16_mxu=True, exact_math=True) # exact f32 math
    noisy_ref_f32, _ = _reference(x, kn, use_bf16_mxu=False, exact_math=True)

    assert noisy.shape == (B, C) and noisy.dtype == x.dtype
    assert pca_noise.shape == (B, C)
    # tight checks vs the matched-precision reference
    assert jnp.allclose(pca_noise, noise_ref_bf, atol=5e-3, rtol=5e-3)
    assert jnp.allclose(noisy, noisy_ref_bf, atol=5e-3, rtol=5e-3)
    assert jnp.allclose(noisy_only, noisy_ref_bf, atol=5e-3, rtol=5e-3)
    # loose checks vs the exact f32 reference (bf16 MXU operand rounding)
    assert jnp.allclose(pca_noise, noise_ref, atol=5e-2, rtol=5e-2)
    assert jnp.allclose(noisy, noisy_ref, atol=5e-2, rtol=5e-2)
    assert jnp.allclose(noisy_f32, noisy_ref_f32, atol=5e-2, rtol=5e-2)

    # aligned fast path (C % 128 == 0, B % tb == 0 -> no pad copy, no slice)
    B2, C2 = 16, 128
    x2 = jax.random.normal(jax.random.PRNGKey(1), (B2, C2), dtype=jnp.float32)
    noisy2 = jax.block_until_ready(svd_pca_noise(x2, kn))
    noisy2_ref, _ = _reference(x2, kn, use_bf16_mxu=True)
    assert noisy2.shape == (B2, C2)
    assert jnp.allclose(noisy2, noisy2_ref, atol=5e-3, rtol=5e-3)

    print("KERNEL_OK")
</pallas_src>

<mosaic_0001>
module attributes {stable_mosaic.version = 11 : i64} {
  func.func @kernel(%arg0: i32, %arg1: i32, %arg2: memref<16x128xf32, #tpu.memory_space<vmem>>, %arg3: memref<16x128xbf16, #tpu.memory_space<vmem>>, %arg4: memref<128x128xbf16, #tpu.memory_space<vmem>>, %arg5: memref<16x128xf32, #tpu.memory_space<vmem>>, %arg6: memref<16x128xf32, #tpu.memory_space<vmem>>) attributes {dimension_semantics = [#tpu.dimension_semantics<parallel>, #tpu.dimension_semantics<parallel>], iteration_bounds = array<i64: 1, 1>, scalar_prefetch = 0 : i64, scratch_operands = 0 : i64, tpu.core_type = #tpu.core_type<tc>, window_params = [{transform_indices = @transform_0, window_bounds = array<i64: 16, 128>}, {transform_indices = @transform_1, window_bounds = array<i64: 16, 128>}, {transform_indices = @transform_2, window_bounds = array<i64: 128, 128>}, {transform_indices = @transform_3, window_bounds = array<i64: 16, 128>}, {transform_indices = @transform_4, window_bounds = array<i64: 16, 128>}]} {
    %c0 = arith.constant 0 : index
    %c0_0 = arith.constant 0 : index
    %0 = vector.load %arg3[%c0, %c0_0] : memref<16x128xbf16, #tpu.memory_space<vmem>>, vector<16x128xbf16>
    %c0_1 = arith.constant 0 : index
    %c0_2 = arith.constant 0 : index
    %1 = vector.load %arg4[%c0_1, %c0_2] : memref<128x128xbf16, #tpu.memory_space<vmem>>, vector<128x128xbf16>
    %cst = arith.constant dense<0.000000e+00> : vector<16x128xf32>
    %2 = tpu.matmul %0, %1, %cst {dimension_numbers = #tpu.dot_dimension_numbers<[1], [0], [0], [1], [0, 0, 1, 1], [], []>} : vector<16x128xbf16>, vector<128x128xbf16>, vector<16x128xf32> -> vector<16x128xf32>
    %c0_3 = arith.constant 0 : index
    %c0_4 = arith.constant 0 : index
    %3 = vector.load %arg2[%c0_3, %c0_4] : memref<16x128xf32, #tpu.memory_space<vmem>>, vector<16x128xf32>
    %4 = arith.addf %3, %2 : vector<16x128xf32>
    %c0_5 = arith.constant 0 : index
    %c0_6 = arith.constant 0 : index
    %5 = vector.load %arg5[%c0_5, %c0_6] : memref<16x128xf32, #tpu.memory_space<vmem>>, vector<16x128xf32>
    tpu.vector_store %arg5[%c0_5, %c0_6], %4 {strides = array<i32>} : memref<16x128xf32, #tpu.memory_space<vmem>>, vector<16x128xf32>,
    %c0_7 = arith.constant 0 : index
    %c0_8 = arith.constant 0 : index
    %6 = vector.load %arg6[%c0_7, %c0_8] : memref<16x128xf32, #tpu.memory_space<vmem>>, vector<16x128xf32>
    tpu.vector_store %arg6[%c0_7, %c0_8], %2 {strides = array<i32>} : memref<16x128xf32, #tpu.memory_space<vmem>>, vector<16x128xf32>,
    return
  }
  func.func @transform_0(%arg0: i32, %arg1: i32) -> (i32, i32) {
    %c0_i32 = arith.constant 0 : i32
    return %arg0, %arg1 : i32, i32
  }
  func.func @transform_1(%arg0: i32, %arg1: i32) -> (i32, i32) {
    %c0_i32 = arith.constant 0 : i32
    %c0_i32_0 = arith.constant 0 : i32
    return %arg0, %c0_i32 : i32, i32
  }
  func.func @transform_2(%arg0: i32, %arg1: i32) -> (i32, i32) {
    %c0_i32 = arith.constant 0 : i32
    %c0_i32_0 = arith.constant 0 : i32
    return %c0_i32, %arg1 : i32, i32
  }
  func.func @transform_3(%arg0: i32, %arg1: i32) -> (i32, i32) {
    %c0_i32 = arith.constant 0 : i32
    return %arg0, %arg1 : i32, i32
  }
  func.func @transform_4(%arg0: i32, %arg1: i32) -> (i32, i32) {
    %c0_i32 = arith.constant 0 : i32
    return %arg0, %arg1 : i32, i32
  }
}

</mosaic_0001>

<bundles_post_ra>
// kernel: custom-call.25
= control target key start
LH: loop header
LB: loop body
LE: loop exit
PB: predicated region body
PF: predicated region fallthrough
CT: control target
= control target key end

     0   :  { %v549_v4 = vmov 0.0   ;;  %s578_s17 = smov 0   ;;  %s737_s0 = inlined_call_operand.vmem [shape: f32[32,16], index: 0, kind: input, shape index: {}]   ;;  %s738_s1 = inlined_call_operand.vmem [shape: f32[32,16], index: 1, kind: output, shape index: {0}]   ;;  %s739_s2 = inlined_call_operand.vmem [shape: f32[16], index: 2, kind: output, shape index: {1}]  }
   0x1   :  { %v38_v0 = vld [vmem:[%s737_s0] sm:$0xff]  ;;  %v40_v1 = vld [vmem:[%s737_s0 + $0x8] sm:$0xff]  ;;  %v42_v2 = vld [vmem:[%s737_s0 + $0x10] sm:$0xff]  ;;  %63 = vst [vmem:[#allocation2] sm:$0x1] %v549_v4 }
   0x2   :  { %v44_v3 = vld [vmem:[%s737_s0 + $0x18] sm:$0xff]  ;;  %50 = vst [vmem:[#allocation1] sm:$0xff] %v38_v0  ;;  %54 = vst [vmem:[#allocation1 + $0x8] sm:$0xff] %v40_v1 }
   0x3   :  { %58 = vst [vmem:[#allocation1 + $0x10] sm:$0xff] %v42_v2  ;;  %62 = vst [vmem:[#allocation1 + $0x18] sm:$0xff] %v44_v3 }
   0x4 LB: > { %v71_v5 = vlaneseq  ;;  %v587_v8 = vstv %s547_s17  ;;  %s128_s0 = scalar_lea.vmem [#allocation1], %s547_s17  ;;  %s164_s18 = smov [#allocation1]  ;;  %s547_s17 = sphi %s578_s17, %s69_s17  }
   0x5   : > { %s240_s19 = scalar_lea.vmem [#allocation4], %s547_s17  ;;  %s655_s20 = smov [#allocation1] }
   0x6   : > { %v584_v7 = vshrl.u32 %v71_v5, 7  ;;  %s257_s21 = smov [#allocation4] }
   0x8   : > { %vm75_vm0 = vcmp.gt.s32.totalorder %v584_v7, %v587_v8  ;;  %v82_v10 = vadd.s32 8, %v584_v7  ;;  %v92_v12 = vadd.s32 16, %v584_v7  ;;  %v102_v14 = vadd.s32 24, %v584_v7 }
   0x9   : > { %v70_v6 = vld [vmem:[#allocation1] sm:$0xff]  ;;  %v79_v9 = vld [vmem:[#allocation1 + $0x8] sm:$0xff]  ;;  %v167_v7 = vmov %v584_v7 }
   0xa   : > { %v89_v11 = vld [vmem:[#allocation1 + $0x10] sm:$0xff]  ;;  %v99_v13 = vld [vmem:[#allocation1 + $0x18] sm:$0xff]  ;;  %v76_v15 = vsel %vm75_vm0, %v70_v6, 0.0  ;;  %vm84_vm1 = vcmp.gt.s32.totalorder %v82_v10, %v587_v8  ;;  %vm94_vm2 = vcmp.gt.s32.totalorder %v92_v12, %v587_v8  ;;  %vm104_vm3 = vcmp.gt.s32.totalorder %v102_v14, %v587_v8  ;;  %v601_v32 = vld [vmem:[%s128_s0] ss:$0 sm:$0xff] }
   0xb   : > { %v77_v16 = vmul.f32 %v76_v15, %v76_v15  ;;  %v85_v17 = vsel %vm84_vm1, %v79_v9, 0.0  ;;  %v95_v18 = vsel %vm94_vm2, %v89_v11, 0.0  ;;  %v107_v19 = vsel %vm104_vm3, %v99_v13, 0.0  ;;  %v504_v1 = vld [vmem:[%s164_s18 + $0x10] sm:$0xff]  ;;  %v168_v2 = vld [vmem:[%s164_s18] sm:$0xff]  ;;  %v505_v3 = vld [vmem:[%s164_s18 + $0x18] sm:$0xff] }
   0xc   : > { %v86_v20 = vmul.f32 %v85_v17, %v85_v17  ;;  %v96_v21 = vmul.f32 %v95_v18, %v95_v18  ;;  %v108_v23 = vmul.f32 %v107_v19, %v107_v19  ;;  %v130_v33 = vand.u32 2147483647, %v601_v32  ;;  %v503_v4 = vld [vmem:[%s164_s18 + $0x8] sm:$0xff] }
   0xd   : > { %vm155_vm9 = vcmp.lt.f32.partialorder %v601_v32, 0.0  ;;  %v222_v62 = vadd.s32 24, %v167_v7  ;;  %v204_v63 = vadd.s32 16, %v167_v7  ;;  %v186_v0 = vadd.s32 8, %v167_v7 }
   0xe   : > { %v87_v22 = vadd.f32 %v86_v20, %v77_v16  ;;  %v131_v38 = vmax.f32 %v130_v33, 0.0  ;;  %vm171_vm12 = vcmp.gt.s32.totalorder %v167_v7, %v587_v8  ;;  %v625_v6 = vand.u32 127, %v71_v5 }
   0xf   : > { %vm224_vm10 = vcmp.gt.s32.totalorder %v222_v62, %v587_v8  ;;  %vm225_vm11 = vcmp.lt.s32.totalorder %v222_v62, 32  ;;  %vm206_vm13 = vcmp.gt.s32.totalorder %v204_v63, %v587_v8  ;;  %vm188_vm15 = vcmp.gt.s32.totalorder %v186_v0, %v587_v8 }
  0x10   : > { %v97_v24 = vadd.f32 %v96_v21, %v87_v22  ;;  %vm226_vm14 = vmand %vm224_vm10, %vm225_vm11  ;;  %v172_v9 = vsel %vm171_vm12, %v168_v2, 0.0  ;;  %v207_v10 = vsel %vm206_vm13, %v504_v1, 0.0  ;;  %v189_v12 = vsel %vm188_vm15, %v503_v4, 0.0 }
  0x11   : > { %v227_v11 = vsel %vm226_vm14, %v505_v3, 0.0  ;;  %vm630_vm0 = vcmp.eq.s32.totalorder %v625_v6, %v587_v8  ;;  %v260_v7 = vmov %v584_v7 }
  0x12   : > { %v109_v25 = vadd.f32 %v108_v23, %v97_v24 }
  0x14   : > { %v110_v26 = vrot.slane %v109_v25, 4 }
  0x16   : > { %v111_v27 = vadd.f32 %v110_v26, %v109_v25 }
  0x18   : > { %v112_v28 = vrot.slane %v111_v27, 2 }
  0x1a   : > { %v113_v29 = vadd.f32 %v112_v28, %v111_v27 }
  0x1c   : > { %v114_v30 = vrot.slane %v113_v29, 1 }
  0x1e   : > { %v597_v31 = vadd.f32 %v114_v30, %v113_v29 }
  0x20   : > { %531 = vrsqrt.f32 %v597_v31  ;;  %vm118_vm4 = vcmp.eq.f32.partialorder %v597_v31, inf  ;;  %v121_v35 = vand.u32 2147483648, %v597_v31  ;;  %vm120_vm5 = vcmp.eq.f32.partialorder %v597_v31, 0.0 }
  0x2d   : > { %v532_v34 = vpop.eup %531 }
  0x2e   : > { %v117_v36 = vmul.f32 %v532_v34, %v597_v31 }
  0x30   : > { %v119_v37 = vsel %vm118_vm4, %v597_v31, %v117_v36  ;;  %v550_v36 = vmov 1.0  }
  0x31   : > { %v122_v39 = vsel %vm120_vm5, %v121_v35, %v119_v37  ;;  %v253_v37 = vld [vmem:[#allocation2] ss:$0 sm:$0xff] }
  0x32   : > { %v132_v40 = vand.u32 2147483647, %v122_v39  ;;  %v263_v39 = vld [vmem:[%s655_s20] sm:$0xff] }
  0x34   : > { %v133_v41 = vmax.f32 %v131_v38, %v132_v40 }
  0x36   : > { %533 = vrcp.f32 %v133_v41  ;;  %vm145_vm8 = vcmp.eq.f32.partialorder %v133_v41, 0.0 }
  0x43   : > { %v534_v42 = vpop.eup %533 }
  0x44   : > { %v135_v43 = vmul.f32 %v534_v42, %v130_v33  ;;  %v138_v44 = vmul.f32 0.0, %v534_v42  ;;  %v142_v45 = vmul.f32 %v534_v42, %v132_v40  ;;  %v507_v40 = vld [vmem:[%s655_s20 + $0x8] sm:$0xff]  ;;  %v279_v42 = vadd.s32 24, %v260_v7 }
  0x45   : > { %v298_v7 = vmov %v584_v7 }
  0x46   : > { %v136_v46 = vmul.f32 %v135_v43, %v135_v43  ;;  %v139_v47 = vmul.f32 %v138_v44, %v138_v44  ;;  %v143_v48 = vmul.f32 %v142_v45, %v142_v45  ;;  %v511_v43 = vld [vmem:[%s655_s20 + $0x18] sm:$0xff]  ;;  %vm285_vm1 = vcmp.lt.s32.totalorder %v279_v42, 32 }
  0x47   : > { %v340_v63 = vadd.s32 16, %v298_v7  ;;  %vm315_vm2 = vcmp.ge.s32.totalorder %v298_v7, %v587_v8  ;;  %v361_v0 = vadd.s32 24, %v298_v7 }
  0x48   : > { %v140_v49 = vadd.f32 %v139_v47, %v136_v46  ;;  %vm675_vm4 = vmand %vm630_vm0, %vm315_vm2 }
  0x4a   : > { %v144_v50 = vadd.f32 %v143_v48, %v140_v49 }
  0x4c   : > { %535 = vrsqrt.f32 %v144_v50  ;;  %vm148_vm6 = vcmp.eq.f32.partialorder %v144_v50, inf  ;;  %v151_v52 = vand.u32 2147483648, %v144_v50  ;;  %vm150_vm7 = vcmp.eq.f32.partialorder %v144_v50, 0.0 }
  0x59   : > { %v536_v51 = vpop.eup %535 }
  0x5a   : > { %v147_v53 = vmul.f32 %v536_v51, %v144_v50 }
  0x5c   : > { %v149_v54 = vsel %vm148_vm6, %v144_v50, %v147_v53  ;;  %vm378_vm6 = vcmp.ge.s32.totalorder %v361_v0, %v587_v8 }
  0x5d   : > { %v152_v55 = vsel %vm150_vm7, %v151_v52, %v149_v54  ;;  %vm698_vm10 = vmand %vm630_vm0, %vm378_vm6 }
  0x5e   : > { %v153_v56 = vmul.f32 %v152_v55, %v133_v41  ;;  %v509_v41 = vld [vmem:[%s655_s20 + $0x10] sm:$0xff]  ;;  %s666_s20 = smov %s655_s20 }
  0x5f   : > { %v305_v2 = vld [vmem:[%s666_s20] sm:$0xff]  ;;  %v513_v3 = vld [vmem:[%s666_s20 + $0x8] sm:$0xff]  ;;  %v516_v4 = vld [vmem:[%s666_s20 + $0x10] sm:$0xff]  ;;  %s382_s22 = scalar_lea.vmem %s666_s20, %s547_s17  ;;  %s69_s17 = sadd.s32 1, %s547_s17  }
  0x60   : > { %v154_v57 = vsel %vm145_vm8, 0.0, %v153_v56  ;;  %vm307_vm8 = vcmp.gt.s32.totalorder %v625_v6, %v587_v8  ;;  %p66_p0 = scmp.ge.s32.totalorder %s69_s17, 16  }
  0x61   : > { %v156_v58 = vxor.u32 2147483648, %v154_v57 }
  0x63   : > { %v157_v59 = vsel %vm155_vm9, %v154_v57, %v156_v58 }
  0x64   : > { %v615_v60 = vsel %vm120_vm5, %v601_v32, %v157_v59  ;;  %537 = vrcp.f32 %v157_v59  ;;  %v158_v13 = vsub.f32 %v157_v59, %v601_v32 }
  0x65   : > { %v163_v61 = vsub.f32 %v601_v32, %v615_v60 }
  0x67   : > { %539 = vrcp.f32 %v163_v61  ;;  %v319_v61 = vadd.s32 8, %v298_v7 }
  0x69   : > { %vm336_vm3 = vcmp.ge.s32.totalorder %v319_v61, %v587_v8 }
  0x6a   : > { %vm684_vm7 = vmand %vm630_vm0, %vm336_vm3 }
  0x71   : > { %v538_v14 = vpop.eup %537 }
  0x72   : > { %v160_v5 = vmul.f32 %v538_v14, %v158_v13 }
  0x74   : > { %v540_v15 = vpop.eup %539  ;;  %v162_v29 = vsel %vm120_vm5, 0.0, %v160_v5 }
  0x75   : > { %v209_v17 = vmul.f32 %v540_v15, %v207_v10  ;;  %v174_v18 = vmul.f32 %v540_v15, %v172_v9  ;;  %v229_v19 = vmul.f32 %v540_v15, %v227_v11  ;;  %v191_v20 = vmul.f32 %v540_v15, %v189_v12  ;;  %v519_v11 = vld [vmem:[%s666_s20 + $0x18] sm:$0xff] }
  0x76   : > { %v246_v30 = vsel %vm630_vm0, %v162_v29, 0.0 }
  0x77   : > { %v210_v21 = vsel %vm120_vm5, 0.0, %v209_v17  ;;  %v175_v22 = vsel %vm120_vm5, 0.0, %v174_v18  ;;  %v230_v23 = vsel %vm120_vm5, 0.0, %v229_v19  ;;  %v192_v24 = vsel %vm120_vm5, 0.0, %v191_v20 }
  0x78   : > { %v215_v25 = vsel %vm630_vm0, %v210_v21, 0.0  ;;  %v180_v26 = vsel %vm630_vm0, %v175_v22, 0.0  ;;  %v235_v27 = vsel %vm630_vm0, %v230_v23, 0.0  ;;  %v197_v28 = vsel %vm630_vm0, %v192_v24, 0.0 }
  0x79   : > { %216 = vadd.xlane.f32.xlu1 %v215_v25  ;;  %181 = vadd.xlane.f32.xlu0 %v180_v26  ;;  %vm357_vm5 = vcmp.ge.s32.totalorder %v340_v63, %v587_v8 }
  0x7a   : > { %vm692_vm9 = vmand %vm630_vm0, %vm357_vm5 }
  0x7d   : > { %236 = vadd.xlane.f32.xlu1 %v235_v27  ;;  %198 = vadd.xlane.f32.xlu0 %v197_v28 }
  0x81   : > { %247 = vadd.xlane.f32.xlu0 %v246_v30 }
 0x102   : > { %v217_v32 = vpop.xlane.xlu1 %216  ;;  %v182_v33 = vpop.xlane.xlu0 %181 }
 0x103   : > { %219 = vst [vmem:[#allocation4 + $0x10] sm:$0xff] %v217_v32  ;;  %183 = vst [vmem:[#allocation4] sm:$0xff] %v182_v33 }
 0x106   : > { %v237_v34 = vpop.xlane.xlu1 %236  ;;  %v199_v35 = vpop.xlane.xlu0 %198 }
 0x107   : > { %239 = vst [vmem:[#allocation4 + $0x18] sm:$0xff] %v237_v34  ;;  %201 = vst [vmem:[#allocation4 + $0x8] sm:$0xff] %v199_v35 }
 0x108   : > { %241 = vst [vmem:[%s240_s19] sm:$0x1] %v550_v36 }
 0x10a   : > { %v248_v31 = vpop.xlane.xlu0 %247 }
 0x10b   : > { %v254_v38 = vsel %vm630_vm0, %v248_v31, %v253_v37 }
 0x10c   : > { %255 = vst [vmem:[#allocation2] sm:$0x1] %v254_v38 }
 0x10f   : > { %v262_v44 = vld [vmem:[%s257_s21] sm:$0xff]  ;;  %v506_v45 = vld [vmem:[%s257_s21 + $0x8] sm:$0xff]  ;;  %v508_v46 = vld [vmem:[%s257_s21 + $0x10] sm:$0xff] }
 0x110   : > { %v264_v47 = vmul.f32 %v263_v39, %v262_v44  ;;  %v270_v48 = vmul.f32 %v507_v40, %v506_v45  ;;  %v510_v49 = vld [vmem:[%s257_s21 + $0x18] sm:$0xff]  ;;  %v277_v52 = vmul.f32 %v509_v41, %v508_v46  ;;  %s295_s21 = smov %s257_s21 }
 0x111   : > { %v284_v50 = vmul.f32 %v511_v43, %v510_v49  ;;  %v303_v9 = vld [vmem:[%s295_s21] sm:$0xff]  ;;  %v512_v13 = vld [vmem:[%s295_s21 + $0x8] sm:$0xff]  ;;  %v515_v14 = vld [vmem:[%s295_s21 + $0x10] sm:$0xff] }
 0x112   : > { %v271_v51 = vadd.f32 %v270_v48, %v264_v47  ;;  %v518_v7 = vld [vmem:[%s295_s21 + $0x18] sm:$0xff] }
 0x113   : > { %v286_v54 = vsel %vm285_vm1, %v284_v50, 0.0  ;;  %v394_v35 = vld [vmem:[#allocation2] sm:$0x1] (%p66_p0) }
 0x114   : > { %v278_v53 = vadd.f32 %v277_v52, %v271_v51  ;;  %397 = vst [vmem:[#allocation3] sm:$0x1] (%p66_p0), %v394_v35 }
 0x116   : > { %v287_v55 = vadd.f32 %v286_v54, %v278_v53 }
 0x118   : > { %v288_v56 = vrot.slane %v287_v55, 4 }
 0x11a   : > { %v289_v57 = vadd.f32 %v288_v56, %v287_v55 }
 0x11c   : > { %v290_v58 = vrot.slane %v289_v57, 2 }
 0x11e   : > { %v291_v59 = vadd.f32 %v290_v58, %v289_v57 }
 0x120   : > { %v292_v62 = vrot.slane %v291_v59, 1 }
 0x122   : > { %v293_v1 = vadd.f32 %v292_v62, %v291_v59 }
 0x124   : > { %v299_v12 = vmul.f32 %v293_v1, %v248_v31  ;;  %v461_v31 = vld [vmem:[#allocation3] sm:$0x1] (%p66_p0) }
 0x125   :  { %462 = vst [vmem:[%s739_s2] sm:$0x1] (%p66_p0), %v461_v31 }
 0x126   : > { %v304_v17 = vmul.f32 %v303_v9, %v299_v12  ;;  %v324_v18 = vmul.f32 %v512_v13, %v299_v12  ;;  %v345_v19 = vmul.f32 %v515_v14, %v299_v12  ;;  %v366_v20 = vmul.f32 %v518_v7, %v299_v12 }
 0x128   : > { %v308_v22 = vsub.f32 %v305_v2, %v304_v17  ;;  %v329_v23 = vsub.f32 %v513_v3, %v324_v18  ;;  %v350_v8 = vsub.f32 %v516_v4, %v345_v19  ;;  %v371_v6 = vsub.f32 %v519_v11, %v366_v20 }
 0x12a   : > { %v309_v24 = vsel %vm307_vm8, %v308_v22, %v305_v2  ;;  %v330_v25 = vsel %vm307_vm8, %v329_v23, %v513_v3  ;;  %v351_v26 = vsel %vm307_vm8, %v350_v8, %v516_v4  ;;  %v372_v27 = vsel %vm307_vm8, %v371_v6, %v519_v11 }
 0x12b   : > { %v317_v28 = vsel %vm675_vm4, %v303_v9, %v309_v24  ;;  %v338_v29 = vsel %vm684_vm7, %v512_v13, %v330_v25  ;;  %v359_v30 = vsel %vm692_vm9, %v515_v14, %v351_v26  ;;  %v380_v32 = vsel %vm698_vm10, %v518_v7, %v372_v27 }
 0x12c   : > { %318 = vst [vmem:[%s666_s20] sm:$0xff] %v317_v28  ;;  %514 = vst [vmem:[%s666_s20 + $0x8] sm:$0xff] %v338_v29 }
 0x12d   : > { %517 = vst [vmem:[%s666_s20 + $0x10] sm:$0xff] %v359_v30  ;;  %520 = vst [vmem:[%s666_s20 + $0x18] sm:$0xff] %v380_v32 }
 0x132   :  { %68 = sbr.rel (!%p66_p0) target bundleno = 4 (0x4), region = 166 }
 0x134   : > { %v383_v33 = vld [vmem:[%s382_s22] ss:$0 sm:$0xff] }
 0x135   : > { %v388_v34 = vsel %vm630_vm0, %v615_v60, %v383_v33 }
 0x136   : > { %389 = vst [vmem:[%s382_s22] sm:$0x1] %v388_v34 }
 0x13d   :  { %v432_v36 = vld [vmem:[#allocation1] sm:$0xff]  ;;  %v434_v37 = vld [vmem:[#allocation1 + $0x8] sm:$0xff]  ;;  %v436_v60 = vld [vmem:[#allocation1 + $0x10] sm:$0xff] }
 0x13e   :  { %433 = vst [vmem:[%s738_s1] sm:$0xff] %v432_v36  ;;  %435 = vst [vmem:[%s738_s1 + $0x8] sm:$0xff] %v434_v37  ;;  %v438_v16 = vld [vmem:[#allocation1 + $0x18] sm:$0xff] }
 0x13f   :  { %437 = vst [vmem:[%s738_s1 + $0x10] sm:$0xff] %v436_v60  ;;  %439 = vst [vmem:[%s738_s1 + $0x18] sm:$0xff] %v438_v16 }

// kernel: custom-call.42
= control target key start
LH: loop header
LB: loop body
LE: loop exit
PB: predicated region body
PF: predicated region fallthrough
CT: control target
= control target key end

     0   :  { %s643_s0 = inlined_call_operand.vmem [shape: f32[16,16], index: 0, kind: input, shape index: {}]   ;;  %s644_s1 = inlined_call_operand.vmem [shape: f32[16,16], index: 1, kind: output, shape index: {}]  }
   0x1   :  { %s15_s8 = scalar_lea.vmem %s643_s0, 8 }
   0x2   :  { %p367_p0 = scmp.gt.s32.totalorder %s643_s0, %s15_s8 }
   0x3   :  { %s569_s11 = smov (!%p367_p0), [#allocation0]   ;;  %s573_s14 = smov (!%p367_p0), %s643_s0  }
   0x4   :  { %368 = sbr.rel (%p367_p0) target bundleno = 17 (0x11), region = 90 }
   0x9 LB: > { %v49_v0 = vld [vmem:[%s575_s14] sm:$0xff]  ;;  %s51_s14 = scalar_lea.vmem %s575_s14, 8   ;;  %s575_s14 = sphi %s573_s14, %s51_s14   ;;  %s571_s11 = sphi %s569_s11, %s52_s11  }
   0xa   : > { %50 = vst [vmem:[%s571_s11] sm:$0xff] %v49_v0  ;;  %s52_s11 = scalar_lea.vmem %s571_s11, 8   ;;  %p46_p1 = scmp.gt.s32.totalorder %s51_s14, %s15_s8 }
   0xc   :  { %48 = sbr.rel (!%p46_p1) target bundleno = 9 (0x9), region = 96 }
  0x11 PF:  { %v65_v1 = vlaneseq  ;;  %v85_v2 = vld [vmem:[#allocation0 + $0x1] ss:$0 sm:$0xff]  ;;  %vm86_vm0 = vcmask 130048   ;;  %v96_v10 = vld [vmem:[#allocation0 + $0x2] ss:$0 sm:$0xff]  ;;  %v585_v41 = vmov 0.0   ;;  %s577_s16 = smov %s644_s1  }
  0x12   :  { %v71_v5 = vld [vmem:[#allocation0] sm:$0xff]  ;;  %v87_v6 = vsel %vm86_vm0, %v85_v2, 0.0  ;;  %v98_v11 = vsel %vm86_vm0, %v96_v10, 0.0  ;;  %v162_v37 = vld [vmem:[#allocation0 + $0x8] ss:$0 sm:$0xff]  ;;  %s581_s17 = smov [#allocation1]  }
  0x13   :  { %v605_v3 = vand.u32 127, %v65_v1  ;;  %v68_v4 = vshrl.u32 %v65_v1, 7  ;;  %v107_v15 = vld [vmem:[#allocation0 + $0x3] ss:$0 sm:$0xff]  ;;  %v118_v20 = vld [vmem:[#allocation0 + $0x4] ss:$0 sm:$0xff] }
  0x14   :  { %v109_v16 = vsel %vm86_vm0, %v107_v15, 0.0  ;;  %v120_v21 = vsel %vm86_vm0, %v118_v20, 0.0  ;;  %v129_v25 = vld [vmem:[#allocation0 + $0x5] ss:$0 sm:$0xff]  ;;  %v140_v30 = vld [vmem:[#allocation0 + $0x6] ss:$0 sm:$0xff] }
  0x15   :  { %vm70_vm1 = vcmp.eq.s32.totalorder %v605_v3, %v68_v4  ;;  %vm74_vm2 = vcmp.eq.s32.totalorder %v605_v3, 0  ;;  %vm90_vm3 = vcmp.eq.s32.totalorder %v605_v3, 1  ;;  %vm101_vm4 = vcmp.eq.s32.totalorder %v605_v3, 2  ;;  %v151_v36 = vld [vmem:[#allocation0 + $0x7] ss:$0 sm:$0xff] }
  0x16   :  { %v75_v7 = vsel %vm74_vm2, %v71_v5, 1.0  ;;  %vm112_vm5 = vcmp.eq.s32.totalorder %v605_v3, 3  ;;  %vm123_vm6 = vcmp.eq.s32.totalorder %v605_v3, 4  ;;  %v131_v26 = vsel %vm86_vm0, %v129_v25, 0.0  ;;  %v177_v47 = vld [vmem:[#allocation0 + $0x9] ss:$0 sm:$0xff] }
  0x17   :  { %v76_v8 = vsel %vm70_vm1, %v75_v7, 0.0  ;;  %vm134_vm7 = vcmp.eq.s32.totalorder %v605_v3, 5  ;;  %v142_v31 = vsel %vm86_vm0, %v140_v30, 0.0  ;;  %v81_v35 = vadd.s32 8, %v68_v4  ;;  %v192_v55 = vld [vmem:[#allocation0 + $0xa] ss:$0 sm:$0xff] }
  0x18   :  { %v91_v9 = vmul.f32 %v87_v6, %v76_v8  ;;  %vm145_vm8 = vcmp.eq.s32.totalorder %v605_v3, 6  ;;  %v153_v38 = vsel %vm86_vm0, %v151_v36, 0.0  ;;  %v164_v43 = vsel %vm86_vm0, %v162_v37, 0.0  ;;  %v207_v63 = vld [vmem:[#allocation0 + $0xb] ss:$0 sm:$0xff] }
  0x19   :  { %vm82_vm9 = vcmp.eq.s32.totalorder %v605_v3, %v81_v35  ;;  %vm156_vm10 = vcmp.eq.s32.totalorder %v605_v3, 7  ;;  %vm167_vm11 = vcmp.eq.s32.totalorder %v605_v3, 8  ;;  %v179_v50 = vsel %vm86_vm0, %v177_v47, 0.0 }
  0x1a   :  { %92 = vadd.xlane.f32.xlu0 %v91_v9  ;;  %v83_v42 = vsel %vm82_vm9, 1.0, %v585_v41  ;;  %vm182_vm12 = vcmp.eq.s32.totalorder %v605_v3, 9  ;;  %v194_v58 = vsel %vm86_vm0, %v192_v55, 0.0  ;;  %vm197_vm13 = vcmp.eq.s32.totalorder %v605_v3, 10 }
  0x1b   :  { %v172_v45 = vmul.f32 %v164_v43, %v83_v42  ;;  %v209_v2 = vsel %vm86_vm0, %v207_v63, 0.0  ;;  %vm212_vm14 = vcmp.eq.s32.totalorder %v605_v3, 11  ;;  %vm227_vm15 = vcmp.eq.s32.totalorder %v605_v3, 12 }
  0x1c   :  { %vm242_vm1 = vcmp.eq.s32.totalorder %v605_v3, 13  ;;  %vm257_vm2 = vcmp.eq.s32.totalorder %v605_v3, 14 }
  0xa3   :  { %v93_v12 = vpop.xlane.xlu0 %92 }
  0xa4   :  { %v94_v13 = vsel %vm90_vm3, %v93_v12, %v76_v8  ;;  %v222_v8 = vld [vmem:[#allocation0 + $0xc] ss:$0 sm:$0xff]  ;;  %vm272_vm3 = vcmp.eq.s32.totalorder %v605_v3, 15 }
  0xa5   :  { %v102_v14 = vmul.f32 %v98_v11, %v94_v13  ;;  %v224_v11 = vsel %vm86_vm0, %v222_v8, 0.0 }
  0xa7   :  { %103 = vadd.xlane.f32.xlu0 %v102_v14 }
 0x130   :  { %v104_v17 = vpop.xlane.xlu0 %103 }
 0x131   :  { %v105_v18 = vsel %vm101_vm4, %v104_v17, %v94_v13 }
 0x132   :  { %v113_v19 = vmul.f32 %v109_v16, %v105_v18  ;;  %v237_v16 = vld [vmem:[#allocation0 + $0xd] ss:$0 sm:$0xff] }
 0x134   :  { %114 = vadd.xlane.f32.xlu1 %v113_v19  ;;  %v239_v19 = vsel %vm86_vm0, %v237_v16, 0.0 }
 0x1bd   :  { %v115_v22 = vpop.xlane.xlu1 %114 }
 0x1be   :  { %v116_v23 = vsel %vm112_vm5, %v115_v22, %v105_v18 }
 0x1bf   :  { %v124_v24 = vmul.f32 %v120_v21, %v116_v23 }
 0x1c1   :  { %125 = vadd.xlane.f32.xlu1 %v124_v24  ;;  %v252_v24 = vld [vmem:[#allocation0 + $0xe] ss:$0 sm:$0xff] }
 0x24a   :  { %v126_v27 = vpop.xlane.xlu1 %125 }
 0x24b   :  { %v127_v28 = vsel %vm123_vm6, %v126_v27, %v116_v23  ;;  %v254_v27 = vsel %vm86_vm0, %v252_v24, 0.0 }
 0x24c   :  { %v135_v29 = vmul.f32 %v131_v26, %v127_v28 }
 0x24e   :  { %136 = vadd.xlane.f32.xlu0 %v135_v29 }
 0x2d7   :  { %v137_v32 = vpop.xlane.xlu0 %136 }
 0x2d8   :  { %v138_v33 = vsel %vm134_vm7, %v137_v32, %v127_v28  ;;  %v267_v32 = vld [vmem:[#allocation0 + $0xf] ss:$0 sm:$0xff] }
 0x2d9   :  { %v146_v34 = vmul.f32 %v142_v31, %v138_v33  ;;  %v269_v35 = vsel %vm86_vm0, %v267_v32, 0.0 }
 0x2db   :  { %147 = vadd.xlane.f32.xlu1 %v146_v34 }
 0x364   :  { %v148_v39 = vpop.xlane.xlu1 %147 }
 0x365   :  { %v149_v40 = vsel %vm145_vm8, %v148_v39, %v138_v33 }
 0x366   :  { %v157_v44 = vmul.f32 %v153_v38, %v149_v40 }
 0x368   :  { %158 = vadd.xlane.f32.xlu0 %v157_v44 }
 0x36c   :  { %173 = vadd.xlane.f32.xlu0 %v172_v45 }
 0x3f1   :  { %v159_v46 = vpop.xlane.xlu0 %158 }
 0x3f2   :  { %v160_v48 = vsel %vm156_vm10, %v159_v46, %v149_v40 }
 0x3f3   :  { %v168_v49 = vmul.f32 %v164_v43, %v160_v48 }
 0x3f5   :  { %169 = vadd.xlane.f32.xlu1 %v168_v49  ;;  %v174_v51 = vpop.xlane.xlu0 %173 }
 0x3f6   :  { %v175_v52 = vsel %vm167_vm11, %v174_v51, %v83_v42 }
 0x3f7   :  { %v187_v53 = vmul.f32 %v179_v50, %v175_v52 }
 0x3f9   :  { %188 = vadd.xlane.f32.xlu0 %v187_v53 }
 0x47e   :  { %v170_v54 = vpop.xlane.xlu1 %169 }
 0x47f   :  { %v171_v56 = vsel %vm167_vm11, %v170_v54, %v160_v48 }
 0x480   :  { %v183_v57 = vmul.f32 %v179_v50, %v171_v56 }
 0x482   :  { %184 = vadd.xlane.f32.xlu1 %v183_v57  ;;  %v189_v59 = vpop.xlane.xlu0 %188 }
 0x483   :  { %v190_v60 = vsel %vm182_vm12, %v189_v59, %v175_v52 }
 0x484   :  { %v202_v61 = vmul.f32 %v194_v58, %v190_v60 }
 0x486   :  { %203 = vadd.xlane.f32.xlu0 %v202_v61 }
 0x50b   :  { %v185_v62 = vpop.xlane.xlu1 %184 }
 0x50c   :  { %v186_v0 = vsel %vm182_vm12, %v185_v62, %v171_v56 }
 0x50d   :  { %v198_v1 = vmul.f32 %v194_v58, %v186_v0 }
 0x50f   :  { %199 = vadd.xlane.f32.xlu1 %v198_v1  ;;  %v204_v4 = vpop.xlane.xlu0 %203 }
 0x510   :  { %v205_v5 = vsel %vm197_vm13, %v204_v4, %v190_v60 }
 0x511   :  { %v217_v6 = vmul.f32 %v209_v2, %v205_v5 }
 0x513   :  { %218 = vadd.xlane.f32.xlu0 %v217_v6 }
 0x598   :  { %v200_v7 = vpop.xlane.xlu1 %199 }
 0x599   :  { %v201_v9 = vsel %vm197_vm13, %v200_v7, %v186_v0 }
 0x59a   :  { %v213_v10 = vmul.f32 %v209_v2, %v201_v9 }
 0x59c   :  { %214 = vadd.xlane.f32.xlu1 %v213_v10  ;;  %v219_v12 = vpop.xlane.xlu0 %218 }
 0x59d   :  { %v220_v13 = vsel %vm212_vm14, %v219_v12, %v205_v5 }
 0x59e   :  { %v232_v14 = vmul.f32 %v224_v11, %v220_v13 }
 0x5a0   :  { %233 = vadd.xlane.f32.xlu0 %v232_v14 }
 0x625   :  { %v215_v15 = vpop.xlane.xlu1 %214 }
 0x626   :  { %v216_v17 = vsel %vm212_vm14, %v215_v15, %v201_v9 }
 0x627   :  { %v228_v18 = vmul.f32 %v224_v11, %v216_v17 }
 0x629   :  { %229 = vadd.xlane.f32.xlu1 %v228_v18  ;;  %v234_v20 = vpop.xlane.xlu0 %233 }
 0x62a   :  { %v235_v21 = vsel %vm227_vm15, %v234_v20, %v220_v13 }
 0x62b   :  { %v247_v22 = vmul.f32 %v239_v19, %v235_v21 }
 0x62d   :  { %248 = vadd.xlane.f32.xlu0 %v247_v22 }
 0x6b2   :  { %v230_v23 = vpop.xlane.xlu1 %229 }
 0x6b3   :  { %v231_v25 = vsel %vm227_vm15, %v230_v23, %v216_v17 }
 0x6b4   :  { %v243_v26 = vmul.f32 %v239_v19, %v231_v25 }
 0x6b6   :  { %244 = vadd.xlane.f32.xlu1 %v243_v26  ;;  %v249_v28 = vpop.xlane.xlu0 %248 }
 0x6b7   :  { %v250_v29 = vsel %vm242_vm1, %v249_v28, %v235_v21 }
 0x6b8   :  { %v262_v30 = vmul.f32 %v254_v27, %v250_v29 }
 0x6ba   :  { %263 = vadd.xlane.f32.xlu0 %v262_v30 }
 0x73f   :  { %v245_v31 = vpop.xlane.xlu1 %244 }
 0x740   :  { %v246_v33 = vsel %vm242_vm1, %v245_v31, %v231_v25 }
 0x741   :  { %v258_v34 = vmul.f32 %v254_v27, %v246_v33 }
 0x743   :  { %259 = vadd.xlane.f32.xlu1 %v258_v34  ;;  %v264_v36 = vpop.xlane.xlu0 %263 }
 0x744   :  { %v265_v37 = vsel %vm257_vm2, %v264_v36, %v250_v29 }
 0x745   :  { %v277_v38 = vmul.f32 %v269_v35, %v265_v37 }
 0x747   :  { %278 = vadd.xlane.f32.xlu0 %v277_v38 }
 0x7cc   :  { %v260_v39 = vpop.xlane.xlu1 %259 }
 0x7cd   :  { %v261_v40 = vsel %vm257_vm2, %v260_v39, %v246_v33 }
 0x7ce   :  { %v273_v41 = vmul.f32 %v269_v35, %v261_v40 }
 0x7d0   :  { %274 = vadd.xlane.f32.xlu1 %v273_v41  ;;  %v279_v42 = vpop.xlane.xlu0 %278 }
 0x7d1   :  { %v280_v43 = vsel %vm272_vm3, %v279_v42, %v265_v37 }
 0x7d2   :  { %283 = vst [vmem:[#allocation1 + $0x8] sm:$0xff] %v280_v43 }
 0x859   :  { %v275_v44 = vpop.xlane.xlu1 %274 }
 0x85a   :  { %v276_v45 = vsel %vm272_vm3, %v275_v44, %v261_v40  }
 0x85b   :  { %281 = vst [vmem:[#allocation1] sm:$0xff] %v276_v45 }
 0x85c LB:  { %s583_s17 = sphi %s581_s17, %s333_s17   ;;  %s579_s16 = sphi %s577_s16, %s334_s16  }
 0x862   : > { %v331_v46 = vld [vmem:[%s583_s17] sm:$0xff]  ;;  %s333_s17 = scalar_lea.vmem %s583_s17, 8  }
 0x863   : > { %332 = vst [vmem:[%s579_s16] sm:$0xff] %v331_v46  ;;  %s334_s16 = scalar_lea.vmem %s579_s16, 8   ;;  %p328_p2 = scmp.gt.s32.totalorder %s333_s17, [#allocation1 + $0x8] }
 0x865   :  { %330 = sbr.rel (!%p328_p2) target bundleno = 2140 (0x85c), region = 118 }

// kernel: custom-call.39
= control target key start
LH: loop header
LB: loop body
LE: loop exit
PB: predicated region body
PF: predicated region fallthrough
CT: control target
= control target key end

     0   :  { %v594_v0 = vmov 0.0   ;;  %vm42_vm0 = vcmask 7168   ;;  %vm73_vm1 = vcmask 15368   ;;  %vm90_vm2 = vcmask 1047553   ;;  %s690_s0 = inlined_call_operand.vmem [shape: f32[16,16], index: 0, kind: input, shape index: {}]   ;;  %s691_s1 = inlined_call_operand.vmem [shape: f32[16,16], index: 1, kind: output, shape index: {}]  }
   0x1   :  { %39 = vst [vmem:[#allocation1] sm:$0xff] %v594_v0  ;;  %v608_v4 = vld [vmem:[%s690_s0] sm:$0xff]  ;;  %v616_v16 = vld [vmem:[%s690_s0 + $0x8] sm:$0xff]  ;;  %vm91_vm3 = vmand %vm73_vm1, %vm90_vm2  ;;  %vm108_vm4 = vcmask 23568   ;;  %vm125_vm5 = vcmask 1047554   ;;  %vm143_vm7 = vcmask 31768  }
   0x2   :  { %33 = vst [vmem:[#allocation0] sm:$0xff] %v608_v4  ;;  %35 = vst [vmem:[#allocation0 + $0x8] sm:$0xff] %v616_v16  ;;  %vm160_vm8 = vcmask 1047555   ;;  %vm178_vm10 = vcmask 39968   ;;  %vm195_vm11 = vcmask 1047556   ;;  %vm213_vm13 = vcmask 48168  }
   0x3   :  { %vm126_vm6 = vmand %vm108_vm4, %vm125_vm5  ;;  %vm230_vm14 = vcmask 1047557  }
   0x4   :  { %vm161_vm9 = vmand %vm143_vm7, %vm160_vm8 }
   0x5   :  { %vm196_vm12 = vmand %vm178_vm10, %vm195_vm11 }
   0x6   :  { %vm231_vm15 = vmand %vm213_vm13, %vm230_vm14 }
   0x8   :  { %v43_v1 = vld [vmem:[#allocation1] ss:$0 sm:$0xff] }
   0x9   :  { %v45_v2 = vmul.f32 %v43_v1, %v43_v1  ;;  %v52_v3 = vmul.f32 0.0, %v43_v1  ;;  %v44_v5 = vld [vmem:[#allocation0] ss:$0 sm:$0xff]  ;;  %v77_v17 = vld [vmem:[#allocation0 + $0x1] ss:$0 sm:$0xff] }
   0xa   :  { %v112_v40 = vld [vmem:[#allocation0 + $0x2] ss:$0 sm:$0xff]  ;;  %v147_v58 = vld [vmem:[#allocation0 + $0x3] ss:$0 sm:$0xff] }
   0xb   :  { %46 = vadd.xlane.f32.xlu0 %v45_v2 }
   0xf   :  { %53 = vadd.xlane.f32.xlu0 %v52_v3 }
  0x94   :  { %v47_v6 = vpop.xlane.xlu0 %46 }
  0x95   :  { %v48_v7 = vsub.f32 %v44_v5, %v47_v6 }
  0x97   :  { %562 = vrsqrt.f32 %v48_v7 }
  0x98   :  { %v54_v8 = vpop.xlane.xlu0 %53 }
  0x99   :  { %v55_v9 = vsub.f32 %v608_v4, %v54_v8 }
  0xa4   :  { %v563_v10 = vpop.eup %562 }
  0xa5   :  { %v56_v11 = vmul.f32 %v563_v10, %v55_v9 }
  0xa7   :  { %v57_v12 = vsel %vm42_vm0, %v56_v11, 0.0 }
  0xa8   :  { %59 = vst [vmem:[#allocation1] sm:$0xff] %v57_v12 }
  0xaf   :  { %v75_v13 = vld [vmem:[#allocation1 + $0x1] ss:$0 sm:$0xff] }
  0xb0   :  { %v85_v14 = vmul.f32 %v75_v13, %v57_v12  ;;  %v78_v15 = vmul.f32 %v75_v13, %v75_v13 }
  0xb2   :  { %86 = vadd.xlane.f32.xlu0 %v85_v14  ;;  %79 = vadd.xlane.f32.xlu1 %v78_v15 }
  0xb6   :  { %65 = vadd.xlane.f32.xlu1 %v52_v3 }
 0x13b   :  { %v80_v18 = vpop.xlane.xlu1 %79  ;;  %v87_v24 = vpop.xlane.xlu0 %86 }
 0x13c   :  { %v81_v19 = vsub.f32 %v77_v17, %v80_v18  ;;  %v88_v26 = vsub.f32 %v608_v4, %v87_v24 }
 0x13e   :  { %564 = vrsqrt.f32 %v81_v19 }
 0x13f   :  { %v66_v20 = vpop.xlane.xlu1 %65 }
 0x140   :  { %v67_v21 = vsub.f32 %v616_v16, %v66_v20 }
 0x142   :  { %v68_v22 = vmul.f32 %v563_v10, %v67_v21 }
 0x144   :  { %v69_v23 = vsel %vm42_vm0, %v68_v22, 0.0  ;;  %vm248_vm0 = vcmask 56368  }
 0x145   :  { %v99_v25 = vmul.f32 %v75_v13, %v69_v23  ;;  %v182_v13 = vld [vmem:[#allocation0 + $0x4] ss:$0 sm:$0xff] }
 0x147   :  { %100 = vadd.xlane.f32.xlu1 %v99_v25 }
 0x14b   :  { %v565_v27 = vpop.eup %564 }
 0x14c   :  { %v89_v28 = vmul.f32 %v565_v27, %v88_v26 }
 0x14e   :  { %v92_v29 = vsel %vm91_vm3, %v89_v28, 0.0 }
 0x14f   :  { %v93_v30 = vadd.f32 %v92_v29, %v57_v12 }
 0x151   :  { %94 = vst [vmem:[#allocation1] sm:$0xff] %v93_v30 }
 0x158   :  { %v110_v31 = vld [vmem:[#allocation1 + $0x2] ss:$0 sm:$0xff] }
 0x159   :  { %v113_v32 = vmul.f32 %v110_v31, %v110_v31  ;;  %v120_v33 = vmul.f32 %v110_v31, %v93_v30 }
 0x15b   :  { %114 = vadd.xlane.f32.xlu0 %v113_v32  ;;  %121 = vadd.xlane.f32.xlu1 %v120_v33  ;;  %v217_v32 = vld [vmem:[#allocation0 + $0x5] ss:$0 sm:$0xff] }
 0x1d0   :  { %v101_v34 = vpop.xlane.xlu1 %100 }
 0x1d1   :  { %v102_v35 = vsub.f32 %v616_v16, %v101_v34 }
 0x1d3   :  { %v103_v36 = vmul.f32 %v565_v27, %v102_v35 }
 0x1d5   :  { %v104_v37 = vsel %vm73_vm1, %v103_v36, 0.0  ;;  %vm265_vm1 = vcmask 1047558  }
 0x1d6   :  { %v105_v38 = vadd.f32 %v104_v37, %v69_v23  ;;  %vm266_vm3 = vmand %vm248_vm0, %vm265_vm1 }
 0x1d8   :  { %v134_v39 = vmul.f32 %v110_v31, %v105_v38 }
 0x1da   :  { %135 = vadd.xlane.f32.xlu0 %v134_v39 }
 0x1e4   :  { %v115_v41 = vpop.xlane.xlu0 %114  ;;  %v122_v43 = vpop.xlane.xlu1 %121 }
 0x1e5   :  { %v116_v42 = vsub.f32 %v112_v40, %v115_v41  ;;  %v123_v44 = vsub.f32 %v608_v4, %v122_v43 }
 0x1e7   :  { %566 = vrsqrt.f32 %v116_v42 }
 0x1f4   :  { %v567_v45 = vpop.eup %566 }
 0x1f5   :  { %v124_v46 = vmul.f32 %v567_v45, %v123_v44 }
 0x1f7   :  { %v127_v47 = vsel %vm126_vm6, %v124_v46, 0.0  ;;  %vm318_vm6 = vcmask 72768  }
 0x1f8   :  { %v128_v48 = vadd.f32 %v127_v47, %v93_v30 }
 0x1fa   :  { %129 = vst [vmem:[#allocation1] sm:$0xff] %v128_v48 }
 0x201   :  { %v145_v49 = vld [vmem:[#allocation1 + $0x3] ss:$0 sm:$0xff] }
 0x202   :  { %v155_v50 = vmul.f32 %v145_v49, %v128_v48  ;;  %v148_v51 = vmul.f32 %v145_v49, %v145_v49 }
 0x204   :  { %156 = vadd.xlane.f32.xlu0 %v155_v50  ;;  %149 = vadd.xlane.f32.xlu1 %v148_v51  ;;  %v252_v50 = vld [vmem:[#allocation0 + $0x6] ss:$0 sm:$0xff] }
 0x263   :  { %v136_v52 = vpop.xlane.xlu0 %135 }
 0x264   :  { %v137_v53 = vsub.f32 %v616_v16, %v136_v52 }
 0x266   :  { %v138_v54 = vmul.f32 %v567_v45, %v137_v53 }
 0x268   :  { %v139_v55 = vsel %vm108_vm4, %v138_v54, 0.0  ;;  %vm283_vm4 = vcmask 64568  }
 0x269   :  { %v140_v56 = vadd.f32 %v139_v55, %v105_v38 }
 0x26b   :  { %v169_v57 = vmul.f32 %v145_v49, %v140_v56 }
 0x26d   :  { %170 = vadd.xlane.f32.xlu1 %v169_v57 }
 0x28d   :  { %v150_v59 = vpop.xlane.xlu1 %149  ;;  %v157_v61 = vpop.xlane.xlu0 %156 }
 0x28e   :  { %v151_v60 = vsub.f32 %v147_v58, %v150_v59  ;;  %v158_v62 = vsub.f32 %v608_v4, %v157_v61 }
 0x290   :  { %568 = vrsqrt.f32 %v151_v60 }
 0x29d   :  { %v569_v63 = vpop.eup %568 }
 0x29e   :  { %v159_v0 = vmul.f32 %v569_v63, %v158_v62 }
 0x2a0   :  { %v162_v1 = vsel %vm161_vm9, %v159_v0, 0.0 }
 0x2a1   :  { %v163_v2 = vadd.f32 %v162_v1, %v128_v48 }
 0x2a3   :  { %164 = vst [vmem:[#allocation1] sm:$0xff] %v163_v2 }
 0x2aa   :  { %v180_v3 = vld [vmem:[#allocation1 + $0x4] ss:$0 sm:$0xff] }
 0x2ab   :  { %v190_v5 = vmul.f32 %v180_v3, %v163_v2  ;;  %v183_v6 = vmul.f32 %v180_v3, %v180_v3 }
 0x2ad   :  { %191 = vadd.xlane.f32.xlu1 %v190_v5  ;;  %184 = vadd.xlane.f32.xlu0 %v183_v6 }
 0x2f6   :  { %v171_v7 = vpop.xlane.xlu1 %170 }
 0x2f7   :  { %v172_v8 = vsub.f32 %v616_v16, %v171_v7 }
 0x2f9   :  { %v173_v9 = vmul.f32 %v569_v63, %v172_v8 }
 0x2fb   :  { %v174_v10 = vsel %vm143_vm7, %v173_v9, 0.0  ;;  %vm341_vm7 = vcmask 80968  }
 0x2fc   :  { %v175_v11 = vadd.f32 %v174_v10, %v140_v56  ;;  %vm361_vm9 = vmand %vm341_vm7, %vm90_vm2 }
 0x2fe   :  { %v204_v12 = vmul.f32 %v180_v3, %v175_v11  ;;  %v287_v3 = vld [vmem:[#allocation0 + $0x7] ss:$0 sm:$0xff] }
 0x300   :  { %205 = vadd.xlane.f32.xlu0 %v204_v12 }
 0x336   :  { %v185_v14 = vpop.xlane.xlu0 %184  ;;  %v192_v17 = vpop.xlane.xlu1 %191 }
 0x337   :  { %v186_v15 = vsub.f32 %v182_v13, %v185_v14  ;;  %v193_v18 = vsub.f32 %v608_v4, %v192_v17  ;;  %v322_v17 = vld [vmem:[#allocation0 + $0x8] ss:$0 sm:$0xff] }
 0x339   :  { %570 = vrsqrt.f32 %v186_v15 }
 0x346   :  { %v571_v19 = vpop.eup %570 }
 0x347   :  { %v194_v20 = vmul.f32 %v571_v19, %v193_v18 }
 0x349   :  { %v197_v21 = vsel %vm196_vm12, %v194_v20, 0.0  ;;  %vm391_vm12 = vcmask 97368  }
 0x34a   :  { %v198_v22 = vadd.f32 %v197_v21, %v163_v2 }
 0x34c   :  { %199 = vst [vmem:[#allocation1] sm:$0xff] %v198_v22 }
 0x353   :  { %v215_v23 = vld [vmem:[#allocation1 + $0x5] ss:$0 sm:$0xff] }
 0x354   :  { %v225_v24 = vmul.f32 %v215_v23, %v198_v22  ;;  %v218_v25 = vmul.f32 %v215_v23, %v215_v23 }
 0x356   :  { %226 = vadd.xlane.f32.xlu0 %v225_v24  ;;  %219 = vadd.xlane.f32.xlu1 %v218_v25 }
 0x389   :  { %v206_v26 = vpop.xlane.xlu0 %205 }
 0x38a   :  { %v207_v27 = vsub.f32 %v616_v16, %v206_v26 }
 0x38c   :  { %v208_v28 = vmul.f32 %v571_v19, %v207_v27 }
 0x38e   :  { %v209_v29 = vsel %vm178_vm10, %v208_v28, 0.0  ;;  %vm366_vm10 = vcmask 89168  }
 0x38f   :  { %v210_v30 = vadd.f32 %v209_v29, %v175_v11  ;;  %v345_v29 = vld [vmem:[#allocation0 + $0x9] ss:$0 sm:$0xff]  ;;  %vm386_vm2 = vmand %vm366_vm10, %vm125_vm5 }
 0x390   :  { %vm411_vm5 = vmand %vm391_vm12, %vm160_vm8 }
 0x391   :  { %v239_v31 = vmul.f32 %v215_v23, %v210_v30 }
 0x393   :  { %240 = vadd.xlane.f32.xlu1 %v239_v31 }
 0x3df   :  { %v220_v33 = vpop.xlane.xlu1 %219  ;;  %v227_v35 = vpop.xlane.xlu0 %226 }
 0x3e0   :  { %v221_v34 = vsub.f32 %v217_v32, %v220_v33  ;;  %v228_v36 = vsub.f32 %v608_v4, %v227_v35 }
 0x3e2   :  { %572 = vrsqrt.f32 %v221_v34 }
 0x3ef   :  { %v573_v37 = vpop.eup %572 }
 0x3f0   :  { %v229_v38 = vmul.f32 %v573_v37, %v228_v36 }
 0x3f2   :  { %v232_v39 = vsel %vm231_vm15, %v229_v38, 0.0  ;;  %vm441_vm15 = vcmask 113768  }
 0x3f3   :  { %v233_v40 = vadd.f32 %v232_v39, %v198_v22 }
 0x3f5   :  { %234 = vst [vmem:[#allocation1] sm:$0xff] %v233_v40 }
 0x3fc   :  { %v250_v41 = vld [vmem:[#allocation1 + $0x6] ss:$0 sm:$0xff] }
 0x3fd   :  { %v260_v42 = vmul.f32 %v250_v41, %v233_v40  ;;  %v253_v43 = vmul.f32 %v250_v41, %v250_v41 }
 0x3ff   :  { %261 = vadd.xlane.f32.xlu1 %v260_v42  ;;  %254 = vadd.xlane.f32.xlu0 %v253_v43 }
 0x41c   :  { %v241_v44 = vpop.xlane.xlu1 %240 }
 0x41d   :  { %v242_v45 = vsub.f32 %v616_v16, %v241_v44 }
 0x41f   :  { %v243_v46 = vmul.f32 %v573_v37, %v242_v45 }
 0x421   :  { %v244_v47 = vsel %vm213_vm13, %v243_v46, 0.0  ;;  %vm416_vm13 = vcmask 105568  }
 0x422   :  { %v245_v48 = vadd.f32 %v244_v47, %v210_v30  ;;  %vm436_vm8 = vmand %vm416_vm13, %vm195_vm11 }
 0x423   :  { %vm461_vm11 = vmand %vm441_vm15, %vm230_vm14 }
 0x424   :  { %v274_v49 = vmul.f32 %v250_v41, %v245_v48  ;;  %v370_v41 = vld [vmem:[#allocation0 + $0xa] ss:$0 sm:$0xff] }
 0x426   :  { %275 = vadd.xlane.f32.xlu0 %v274_v49 }
 0x488   :  { %v255_v51 = vpop.xlane.xlu0 %254  ;;  %v262_v53 = vpop.xlane.xlu1 %261 }
 0x489   :  { %v256_v52 = vsub.f32 %v252_v50, %v255_v51  ;;  %v263_v54 = vsub.f32 %v608_v4, %v262_v53  ;;  %v395_v53 = vld [vmem:[#allocation0 + $0xb] ss:$0 sm:$0xff] }
 0x48b   :  { %574 = vrsqrt.f32 %v256_v52 }
 0x498   :  { %v575_v55 = vpop.eup %574 }
 0x499   :  { %v264_v56 = vmul.f32 %v575_v55, %v263_v54 }
 0x49b   :  { %v267_v57 = vsel %vm266_vm3, %v264_v56, 0.0  ;;  %vm466_vm3 = vcmask 121968  }
 0x49c   :  { %v648_v58 = vadd.f32 %v267_v57, %v233_v40 }
 0x49e   :  { %269 = vst [vmem:[#allocation1] sm:$0xff] %v648_v58 }
 0x4a5   :  { %v651_v59 = vld [vmem:[#allocation1 + $0x7] ss:$0 sm:$0xff] }
 0x4a6   :  { %v288_v60 = vmul.f32 %v651_v59, %v651_v59 }
 0x4a8   :  { %289 = vadd.xlane.f32.xlu1 %v288_v60 }
 0x4af   :  { %v276_v61 = vpop.xlane.xlu0 %275 }
 0x4b0   :  { %v277_v62 = vsub.f32 %v616_v16, %v276_v61 }
 0x4b2   :  { %v278_v63 = vmul.f32 %v575_v55, %v277_v62 }
 0x4b4   :  { %v279_v0 = vsel %vm248_vm0, %v278_v63, 0.0  ;;  %vm300_vm0 = vcmask 1047559  }
 0x4b5   :  { %v280_v1 = vadd.f32 %v279_v0, %v245_v48  ;;  %vm301_vm14 = vmand %vm283_vm4, %vm300_vm0 }
 0x4b7   :  { %v309_v2 = vmul.f32 %v651_v59, %v280_v1 }
 0x4b9   :  { %310 = vadd.xlane.f32.xlu0 %v309_v2 }
 0x531   :  { %v290_v5 = vpop.xlane.xlu1 %289 }
 0x532   :  { %v291_v6 = vsub.f32 %v287_v3, %v290_v5  ;;  %v420_v3 = vld [vmem:[#allocation0 + $0xc] ss:$0 sm:$0xff] }
 0x534   :  { %576 = vrsqrt.f32 %v291_v6 }
 0x541   :  { %v658_v9 = vpop.eup %576 }
 0x542   :  { %v311_v7 = vpop.xlane.xlu0 %310 }
 0x543   :  { %v312_v8 = vsub.f32 %v616_v16, %v311_v7 }
 0x545   :  { %v313_v10 = vmul.f32 %v658_v9, %v312_v8 }
 0x547   :  { %v314_v11 = vsel %vm283_vm4, %v313_v10, 0.0  ;;  %vm491_vm4 = vcmask 130168  }
 0x548   :  { %v315_v12 = vadd.f32 %v314_v11, %v280_v1 }
 0x54a   :  { %317 = vst [vmem:[#allocation1 + $0x8] sm:$0xff] %v315_v12 }
 0x551   :  { %v320_v13 = vld [vmem:[#allocation1 + $0x8] ss:$0 sm:$0xff] }
 0x552   :  { %v332_v14 = vmul.f32 %v320_v13, %v315_v12  ;;  %v323_v15 = vmul.f32 %v320_v13, %v320_v13 }
 0x554   :  { %333 = vadd.xlane.f32.xlu0 %v332_v14  ;;  %324 = vadd.xlane.f32.xlu1 %v323_v15 }
 0x5dd   :  { %v325_v18 = vpop.xlane.xlu1 %324  ;;  %v334_v20 = vpop.xlane.xlu0 %333 }
 0x5de   :  { %v326_v19 = vsub.f32 %v322_v17, %v325_v18  ;;  %v335_v21 = vsub.f32 %v616_v16, %v334_v20  ;;  %v445_v18 = vld [vmem:[#allocation0 + $0xd] ss:$0 sm:$0xff] }
 0x5e0   :  { %578 = vrsqrt.f32 %v326_v19 }
 0x5ed   :  { %v579_v22 = vpop.eup %578 }
 0x5ee   :  { %v336_v23 = vmul.f32 %v579_v22, %v335_v21 }
 0x5f0   :  { %v337_v24 = vsel %vm318_vm6, %v336_v23, 0.0  ;;  %vm486_vm6 = vmand %vm466_vm3, %vm265_vm1 }
 0x5f1   :  { %v338_v25 = vadd.f32 %v337_v24, %v315_v12  ;;  %vm511_vm1 = vmand %vm491_vm4, %vm300_vm0 }
 0x5f3   :  { %340 = vst [vmem:[#allocation1 + $0x8] sm:$0xff] %v338_v25 }
 0x5fa   :  { %v343_v26 = vld [vmem:[#allocation1 + $0x9] ss:$0 sm:$0xff] }
 0x5fb   :  { %v355_v27 = vmul.f32 %v343_v26, %v338_v25  ;;  %v346_v28 = vmul.f32 %v343_v26, %v343_v26 }
 0x5fd   :  { %356 = vadd.xlane.f32.xlu0 %v355_v27  ;;  %347 = vadd.xlane.f32.xlu1 %v346_v28 }
 0x686   :  { %v348_v30 = vpop.xlane.xlu1 %347  ;;  %v357_v32 = vpop.xlane.xlu0 %356 }
 0x687   :  { %v349_v31 = vsub.f32 %v345_v29, %v348_v30  ;;  %v358_v33 = vsub.f32 %v616_v16, %v357_v32  ;;  %v295_v30 = vmul.f32 %v651_v59, %v648_v58 }
 0x689   :  { %580 = vrsqrt.f32 %v349_v31  ;;  %v470_v31 = vld [vmem:[#allocation0 + $0xe] ss:$0 sm:$0xff] }
 0x696   :  { %v581_v34 = vpop.eup %580 }
 0x697   :  { %v359_v35 = vmul.f32 %v581_v34, %v358_v33 }
 0x699   :  { %v362_v36 = vsel %vm361_vm9, %v359_v35, 0.0 }
 0x69a   :  { %v363_v37 = vadd.f32 %v362_v36, %v338_v25 }
 0x69c   :  { %365 = vst [vmem:[#allocation1 + $0x8] sm:$0xff] %v363_v37 }
 0x6a3   :  { %v368_v38 = vld [vmem:[#allocation1 + $0xa] ss:$0 sm:$0xff] }
 0x6a4   :  { %v380_v39 = vmul.f32 %v368_v38, %v363_v37  ;;  %v371_v40 = vmul.f32 %v368_v38, %v368_v38 }
 0x6a6   :  { %381 = vadd.xlane.f32.xlu0 %v380_v39  ;;  %372 = vadd.xlane.f32.xlu1 %v371_v40 }
 0x72f   :  { %v373_v42 = vpop.xlane.xlu1 %372  ;;  %v382_v44 = vpop.xlane.xlu0 %381 }
 0x730   :  { %v374_v43 = vsub.f32 %v370_v41, %v373_v42  ;;  %v383_v45 = vsub.f32 %v616_v16, %v382_v44 }
 0x732   :  { %582 = vrsqrt.f32 %v374_v43 }
 0x73f   :  { %v583_v46 = vpop.eup %582 }
 0x740   :  { %v384_v47 = vmul.f32 %v583_v46, %v383_v45 }
 0x742   :  { %v387_v48 = vsel %vm386_vm2, %v384_v47, 0.0 }
 0x743   :  { %v388_v49 = vadd.f32 %v387_v48, %v363_v37 }
 0x745   :  { %390 = vst [vmem:[#allocation1 + $0x8] sm:$0xff] %v388_v49 }
 0x74c   :  { %v393_v50 = vld [vmem:[#allocation1 + $0xb] ss:$0 sm:$0xff] }
 0x74d   :  { %v405_v51 = vmul.f32 %v393_v50, %v388_v49  ;;  %v396_v52 = vmul.f32 %v393_v50, %v393_v50 }
 0x74f   :  { %406 = vadd.xlane.f32.xlu0 %v405_v51  ;;  %397 = vadd.xlane.f32.xlu1 %v396_v52 }
 0x7d8   :  { %v398_v54 = vpop.xlane.xlu1 %397  ;;  %v407_v56 = vpop.xlane.xlu0 %406 }
 0x7d9   :  { %v399_v55 = vsub.f32 %v395_v53, %v398_v54  ;;  %v408_v57 = vsub.f32 %v616_v16, %v407_v56 }
 0x7db   :  { %584 = vrsqrt.f32 %v399_v55 }
 0x7e8   :  { %v585_v60 = vpop.eup %584 }
 0x7e9   :  { %v409_v61 = vmul.f32 %v585_v60, %v408_v57 }
 0x7eb   :  { %v412_v62 = vsel %vm411_vm5, %v409_v61, 0.0 }
 0x7ec   :  { %v413_v63 = vadd.f32 %v412_v62, %v388_v49 }
 0x7ee   :  { %415 = vst [vmem:[#allocation1 + $0x8] sm:$0xff] %v413_v63 }
 0x7f5   :  { %v418_v0 = vld [vmem:[#allocation1 + $0xc] ss:$0 sm:$0xff] }
 0x7f6   :  { %v430_v1 = vmul.f32 %v418_v0, %v413_v63  ;;  %v421_v2 = vmul.f32 %v418_v0, %v418_v0 }
 0x7f8   :  { %431 = vadd.xlane.f32.xlu0 %v430_v1  ;;  %422 = vadd.xlane.f32.xlu1 %v421_v2 }
 0x881   :  { %v423_v5 = vpop.xlane.xlu1 %422  ;;  %v432_v7 = vpop.xlane.xlu0 %431 }
 0x882   :  { %v424_v6 = vsub.f32 %v420_v3, %v423_v5  ;;  %v433_v8 = vsub.f32 %v616_v16, %v432_v7 }
 0x884   :  { %586 = vrsqrt.f32 %v424_v6 }
 0x891   :  { %v587_v10 = vpop.eup %586 }
 0x892   :  { %v434_v11 = vmul.f32 %v587_v10, %v433_v8 }
 0x894   :  { %v437_v12 = vsel %vm436_vm8, %v434_v11, 0.0 }
 0x895   :  { %v438_v13 = vadd.f32 %v437_v12, %v413_v63 }
 0x897   :  { %440 = vst [vmem:[#allocation1 + $0x8] sm:$0xff] %v438_v13 }
 0x89e   :  { %v443_v14 = vld [vmem:[#allocation1 + $0xd] ss:$0 sm:$0xff] }
 0x89f   :  { %v455_v15 = vmul.f32 %v443_v14, %v438_v13  ;;  %v446_v17 = vmul.f32 %v443_v14, %v443_v14 }
 0x8a1   :  { %456 = vadd.xlane.f32.xlu0 %v455_v15  ;;  %447 = vadd.xlane.f32.xlu1 %v446_v17 }
 0x92a   :  { %v448_v19 = vpop.xlane.xlu1 %447  ;;  %v457_v21 = vpop.xlane.xlu0 %456 }
 0x92b   :  { %v449_v20 = vsub.f32 %v445_v18, %v448_v19  ;;  %v458_v22 = vsub.f32 %v616_v16, %v457_v21 }
 0x92d   :  { %588 = vrsqrt.f32 %v449_v20 }
 0x93a   :  { %v589_v23 = vpop.eup %588 }
 0x93b   :  { %v459_v24 = vmul.f32 %v589_v23, %v458_v22 }
 0x93d   :  { %v462_v25 = vsel %vm461_vm11, %v459_v24, 0.0 }
 0x93e   :  { %v463_v26 = vadd.f32 %v462_v25, %v438_v13 }
 0x940   :  { %465 = vst [vmem:[#allocation1 + $0x8] sm:$0xff] %v463_v26 }
 0x947   :  { %v468_v27 = vld [vmem:[#allocation1 + $0xe] ss:$0 sm:$0xff] }
 0x948   :  { %v480_v28 = vmul.f32 %v468_v27, %v463_v26  ;;  %v471_v29 = vmul.f32 %v468_v27, %v468_v27 }
 0x94a   :  { %481 = vadd.xlane.f32.xlu0 %v480_v28  ;;  %472 = vadd.xlane.f32.xlu1 %v471_v29 }
 0x94e   :  { %296 = vadd.xlane.f32.xlu0 %v295_v30 }
 0x9d3   :  { %v482_v32 = vpop.xlane.xlu0 %481  ;;  %v473_v33 = vpop.xlane.xlu1 %472 }
 0x9d4   :  { %v474_v34 = vsub.f32 %v470_v31, %v473_v33  ;;  %v483_v59 = vsub.f32 %v616_v16, %v482_v32 }
 0x9d6   :  { %590 = vrsqrt.f32 %v474_v34 }
 0x9d7   :  { %v297_v35 = vpop.xlane.xlu0 %296 }
 0x9d8   :  { %v298_v36 = vsub.f32 %v608_v4, %v297_v35 }
 0x9da   :  { %v299_v37 = vmul.f32 %v658_v9, %v298_v36 }
 0x9dc   :  { %v302_v38 = vsel %vm301_vm14, %v299_v37, 0.0 }
 0x9dd   :  { %v303_v39 = vadd.f32 %v302_v38, %v648_v58  ;;  %v495_v58 = vld [vmem:[#allocation0 + $0xf] ss:$0 sm:$0xff] }
 0x9df   :  { %304 = vst [vmem:[#allocation1] sm:$0xff] %v303_v39  ;;  %547 = vst [vmem:[%s691_s1] sm:$0xff] %v303_v39 }
 0x9e3   :  { %v591_v40 = vpop.eup %590 }
 0x9e4   :  { %v484_v4 = vmul.f32 %v591_v40, %v483_v59 }
 0x9e6   :  { %v487_v41 = vsel %vm486_vm6, %v484_v4, 0.0 }
 0x9e7   :  { %v488_v42 = vadd.f32 %v487_v41, %v463_v26 }
 0x9e9   :  { %490 = vst [vmem:[#allocation1 + $0x8] sm:$0xff] %v488_v42 }
 0x9f0   :  { %v493_v43 = vld [vmem:[#allocation1 + $0xf] ss:$0 sm:$0xff] }
 0x9f1   :  { %v496_v9 = vmul.f32 %v493_v43, %v493_v43  ;;  %v505_v44 = vmul.f32 %v493_v43, %v488_v42 }
 0x9f3   :  { %497 = vadd.xlane.f32.xlu1 %v496_v9 }
 0x9f7   :  { %506 = vadd.xlane.f32.xlu1 %v505_v44 }
 0xa7c   :  { %v498_v45 = vpop.xlane.xlu1 %497 }
 0xa7d   :  { %v499_v46 = vsub.f32 %v495_v58, %v498_v45 }
 0xa7f   :  { %592 = vrsqrt.f32 %v499_v46 }
 0xa80   :  { %v507_v47 = vpop.xlane.xlu1 %506 }
 0xa81   :  { %v508_v48 = vsub.f32 %v616_v16, %v507_v47 }
 0xa8c   :  { %v593_v49 = vpop.eup %592 }
 0xa8d   :  { %v509_v50 = vmul.f32 %v593_v49, %v508_v48 }
 0xa8f   :  { %v512_v51 = vsel %vm511_vm1, %v509_v50, 0.0 }
 0xa90   :  { %v513_v52 = vadd.f32 %v512_v51, %v488_v42 }
 0xa92   :  { %515 = vst [vmem:[#allocation1 + $0x8] sm:$0xff] %v513_v52  ;;  %549 = vst [vmem:[%s691_s1 + $0x8] sm:$0xff] %v513_v52 }

// kernel: custom-call.40
= control target key start
LH: loop header
LB: loop body
LE: loop exit
PB: predicated region body
PF: predicated region fallthrough
CT: control target
= control target key end

     0   :  { %v39_v0 = vlaneseq  ;;  %v334_v9 = vmov -1.0   ;;  %v335_v53 = vmov 0.0   ;;  %s403_s0 = inlined_call_operand.vmem [shape: f32[1,16,16], index: 0, kind: input, shape index: {}]   ;;  %s404_s1 = inlined_call_operand.vmem [shape: f32[1,16,16], index: 1, kind: output, shape index: {}]  }
   0x1   :  { %v32_v1 = vld [vmem:[%s403_s0] sm:$0xff]  ;;  %v34_v36 = vld [vmem:[%s403_s0 + $0x8] sm:$0xff] }
   0x2   :  { %v349_v2 = vand.u32 127, %v39_v0  ;;  %v43_v3 = vshrl.u32 %v39_v0, 7 }
   0x4   :  { %vm45_vm0 = vcmp.eq.s32.totalorder %v43_v3, %v349_v2  ;;  %vm41_vm1 = vcmp.lt.s32.totalorder %v349_v2, 16  ;;  %vm50_vm2 = vcmp.ge.s32.totalorder %v43_v3, %v349_v2  ;;  %vm80_vm4 = vcmp.eq.s32.totalorder %v349_v2, 0 }
   0x5   :  { %v47_v4 = vsel %vm45_vm0, %v32_v1, 0.0  ;;  %vm51_vm3 = vmand %vm50_vm2, %vm41_vm1  ;;  %vm77_vm5 = vcmp.eq.s32.totalorder %v349_v2, %v43_v3  ;;  %v81_v10 = vsel %vm80_vm4, 1.0, %v334_v9  ;;  %vm95_vm6 = vcmp.eq.s32.totalorder %v349_v2, 1 }
   0x6   :  { %48 = vadd.xlane.f32.xlu0 %v47_v4  ;;  %v52_v6 = vsel %vm51_vm3, %v32_v1, 0.0  ;;  %v82_v11 = vsel %vm77_vm5, %v81_v10, 0.0  ;;  %vm105_vm7 = vcmp.eq.s32.totalorder %v349_v2, 2  ;;  %vm115_vm8 = vcmp.eq.s32.totalorder %v349_v2, 3 }
   0x7   :  { %vm125_vm9 = vcmp.eq.s32.totalorder %v349_v2, 4  ;;  %v60_v31 = vadd.s32 8, %v43_v3  ;;  %vm135_vm11 = vcmp.eq.s32.totalorder %v349_v2, 5  ;;  %vm145_vm14 = vcmp.eq.s32.totalorder %v349_v2, 6 }
   0x8   :  { %vm155_vm0 = vcmp.eq.s32.totalorder %v349_v2, 7  ;;  %vm179_vm2 = vcmp.eq.s32.totalorder %v349_v2, 9  ;;  %vm193_vm3 = vcmp.eq.s32.totalorder %v349_v2, 10  ;;  %vm207_vm4 = vcmp.eq.s32.totalorder %v349_v2, 11 }
   0x9   :  { %vm61_vm10 = vcmp.eq.s32.totalorder %v60_v31, %v349_v2  ;;  %vm66_vm12 = vcmp.ge.s32.totalorder %v60_v31, %v349_v2  ;;  %vm88_vm15 = vcmp.eq.s32.totalorder %v349_v2, %v60_v31  ;;  %vm221_vm5 = vcmp.eq.s32.totalorder %v349_v2, 12 }
   0xa   :  { %v63_v37 = vsel %vm61_vm10, %v34_v36, 0.0  ;;  %vm67_vm13 = vmand %vm66_vm12, %vm41_vm1  ;;  %v89_v54 = vsel %vm88_vm15, -1.0, %v335_v53  ;;  %vm165_vm1 = vcmp.eq.s32.totalorder %v349_v2, 8 }
   0xb   :  { %v68_v44 = vsel %vm67_vm13, %v34_v36, 0.0 }
  0x8f   :  { %v352_v5 = vpop.xlane.xlu0 %48 }
  0x90   :  { %330 = vrcp.f32 %v352_v5  ;;  %vm274_vm10 = vweird.f32 %v352_v5 }
  0x9d   :  { %v359_v7 = vpop.eup %330 }
  0x9e   :  { %v54_v8 = vmul.f32 %v359_v7, %v52_v6 }
  0xa0   :  { %55 = vst [vmem:[#allocation2] sm:$0xff] %v54_v8 }
  0xa7   :  { %v91_v12 = vld [vmem:[#allocation2 + $0x1] ss:$0 sm:$0xff]  ;;  %v101_v15 = vld [vmem:[#allocation2 + $0x2] ss:$0 sm:$0xff]  ;;  %v111_v20 = vld [vmem:[#allocation2 + $0x3] ss:$0 sm:$0xff] }
  0xa8   :  { %v92_v13 = vxor.u32 2147483648, %v91_v12  ;;  %v102_v17 = vxor.u32 2147483648, %v101_v15  ;;  %v112_v22 = vxor.u32 2147483648, %v111_v20  ;;  %v121_v25 = vld [vmem:[#allocation2 + $0x4] ss:$0 sm:$0xff] }
  0xa9   :  { %v122_v27 = vxor.u32 2147483648, %v121_v25  ;;  %v131_v30 = vld [vmem:[#allocation2 + $0x5] ss:$0 sm:$0xff]  ;;  %v141_v38 = vld [vmem:[#allocation2 + $0x6] ss:$0 sm:$0xff] }
  0xaa   :  { %v96_v14 = vmul.f32 %v92_v13, %v82_v11  ;;  %v132_v33 = vxor.u32 2147483648, %v131_v30  ;;  %v142_v40 = vxor.u32 2147483648, %v141_v38  ;;  %v151_v47 = vld [vmem:[#allocation2 + $0x7] ss:$0 sm:$0xff] }
  0xab   :  { %v152_v50 = vxor.u32 2147483648, %v151_v47 }
  0xac   :  { %97 = vadd.xlane.f32.xlu0 %v96_v14 }
 0x135   :  { %v98_v16 = vpop.xlane.xlu0 %97 }
 0x136   :  { %v99_v18 = vsel %vm95_vm6, %v98_v16, %v82_v11  ;;  %vm235_vm6 = vcmp.eq.s32.totalorder %v349_v2, 13 }
 0x137   :  { %v106_v19 = vmul.f32 %v102_v17, %v99_v18 }
 0x139   :  { %107 = vadd.xlane.f32.xlu1 %v106_v19 }
 0x1c2   :  { %v108_v21 = vpop.xlane.xlu1 %107 }
 0x1c3   :  { %v109_v23 = vsel %vm105_vm7, %v108_v21, %v99_v18  ;;  %vm249_vm7 = vcmp.eq.s32.totalorder %v349_v2, 14 }
 0x1c4   :  { %v116_v24 = vmul.f32 %v112_v22, %v109_v23 }
 0x1c6   :  { %117 = vadd.xlane.f32.xlu1 %v116_v24 }
 0x24f   :  { %v118_v26 = vpop.xlane.xlu1 %117 }
 0x250   :  { %v119_v28 = vsel %vm115_vm8, %v118_v26, %v109_v23  ;;  %vm263_vm8 = vcmp.eq.s32.totalorder %v349_v2, 15 }
 0x251   :  { %v126_v29 = vmul.f32 %v122_v27, %v119_v28 }
 0x253   :  { %127 = vadd.xlane.f32.xlu0 %v126_v29 }
 0x2dc   :  { %v128_v32 = vpop.xlane.xlu0 %127 }
 0x2dd   :  { %v129_v34 = vsel %vm125_vm9, %v128_v32, %v119_v28 }
 0x2de   :  { %v136_v35 = vmul.f32 %v132_v33, %v129_v34 }
 0x2e0   :  { %137 = vadd.xlane.f32.xlu1 %v136_v35 }
 0x2e4   :  { %64 = vadd.xlane.f32.xlu1 %v63_v37 }
 0x369   :  { %v138_v39 = vpop.xlane.xlu1 %137 }
 0x36a   :  { %v139_v41 = vsel %vm135_vm11, %v138_v39, %v129_v34 }
 0x36b   :  { %v146_v42 = vmul.f32 %v142_v40, %v139_v41 }
 0x36d   :  { %147 = vadd.xlane.f32.xlu0 %v146_v42  ;;  %v373_v43 = vpop.xlane.xlu1 %64 }
 0x36e   :  { %332 = vrcp.f32 %v373_v43  ;;  %vm279_vm9 = vweird.f32 %v373_v43 }
 0x37b   :  { %v379_v45 = vpop.eup %332 }
 0x37c   :  { %v70_v46 = vmul.f32 %v379_v45, %v68_v44 }
 0x37e   :  { %71 = vst [vmem:[#allocation2 + $0x8] sm:$0xff] %v70_v46 }
 0x385   :  { %v161_v48 = vld [vmem:[#allocation2 + $0x8] ss:$0 sm:$0xff]  ;;  %v175_v59 = vld [vmem:[#allocation2 + $0x9] ss:$0 sm:$0xff]  ;;  %v189_v4 = vld [vmem:[#allocation2 + $0xa] ss:$0 sm:$0xff] }
 0x386   :  { %v162_v51 = vxor.u32 2147483648, %v161_v48  ;;  %v176_v62 = vxor.u32 2147483648, %v175_v59  ;;  %v190_v9 = vxor.u32 2147483648, %v189_v4  ;;  %v203_v14 = vld [vmem:[#allocation2 + $0xb] ss:$0 sm:$0xff] }
 0x387   :  { %v204_v17 = vxor.u32 2147483648, %v203_v14  ;;  %v217_v22 = vld [vmem:[#allocation2 + $0xc] ss:$0 sm:$0xff]  ;;  %v231_v30 = vld [vmem:[#allocation2 + $0xd] ss:$0 sm:$0xff] }
 0x388   :  { %v170_v56 = vmul.f32 %v162_v51, %v89_v54  ;;  %v218_v25 = vxor.u32 2147483648, %v217_v22  ;;  %v232_v33 = vxor.u32 2147483648, %v231_v30  ;;  %v245_v38 = vld [vmem:[#allocation2 + $0xe] ss:$0 sm:$0xff]  ;;  %v259_v48 = vld [vmem:[#allocation2 + $0xf] ss:$0 sm:$0xff] }
 0x3f6   :  { %v148_v49 = vpop.xlane.xlu0 %147 }
 0x3f7   :  { %v149_v52 = vsel %vm145_vm14, %v148_v49, %v139_v41  ;;  %v246_v41 = vxor.u32 2147483648, %v245_v38 }
 0x3f8   :  { %v156_v55 = vmul.f32 %v152_v50, %v149_v52 }
 0x3fa   :  { %157 = vadd.xlane.f32.xlu0 %v156_v55 }
 0x3fe   :  { %171 = vadd.xlane.f32.xlu0 %v170_v56 }
 0x483   :  { %v158_v57 = vpop.xlane.xlu0 %157 }
 0x484   :  { %v159_v58 = vsel %vm155_vm0, %v158_v57, %v149_v52 }
 0x485   :  { %v166_v60 = vmul.f32 %v162_v51, %v159_v58  ;;  %v260_v51 = vxor.u32 2147483648, %v259_v48 }
 0x487   :  { %v172_v61 = vpop.xlane.xlu0 %171  ;;  %167 = vadd.xlane.f32.xlu1 %v166_v60 }
 0x488   :  { %v173_v63 = vsel %vm165_vm1, %v172_v61, %v89_v54 }
 0x489   :  { %v184_v0 = vmul.f32 %v176_v62, %v173_v63 }
 0x48b   :  { %185 = vadd.xlane.f32.xlu0 %v184_v0 }
 0x510   :  { %v168_v1 = vpop.xlane.xlu1 %167 }
 0x511   :  { %v169_v3 = vsel %vm165_vm1, %v168_v1, %v159_v58 }
 0x512   :  { %v180_v6 = vmul.f32 %v176_v62, %v169_v3 }
 0x514   :  { %v186_v8 = vpop.xlane.xlu0 %185  ;;  %181 = vadd.xlane.f32.xlu1 %v180_v6 }
 0x515   :  { %v187_v10 = vsel %vm179_vm2, %v186_v8, %v173_v63 }
 0x516   :  { %v198_v11 = vmul.f32 %v190_v9, %v187_v10 }
 0x518   :  { %199 = vadd.xlane.f32.xlu0 %v198_v11 }
 0x59d   :  { %v182_v12 = vpop.xlane.xlu1 %181 }
 0x59e   :  { %v183_v13 = vsel %vm179_vm2, %v182_v12, %v169_v3 }
 0x59f   :  { %v194_v15 = vmul.f32 %v190_v9, %v183_v13 }
 0x5a1   :  { %v200_v16 = vpop.xlane.xlu0 %199  ;;  %195 = vadd.xlane.f32.xlu1 %v194_v15 }
 0x5a2   :  { %v201_v18 = vsel %vm193_vm3, %v200_v16, %v187_v10 }
 0x5a3   :  { %v212_v19 = vmul.f32 %v204_v17, %v201_v18 }
 0x5a5   :  { %213 = vadd.xlane.f32.xlu0 %v212_v19 }
 0x62a   :  { %v196_v20 = vpop.xlane.xlu1 %195 }
 0x62b   :  { %v197_v21 = vsel %vm193_vm3, %v196_v20, %v183_v13 }
 0x62c   :  { %v208_v23 = vmul.f32 %v204_v17, %v197_v21 }
 0x62e   :  { %v214_v24 = vpop.xlane.xlu0 %213  ;;  %209 = vadd.xlane.f32.xlu1 %v208_v23 }
 0x62f   :  { %v215_v26 = vsel %vm207_vm4, %v214_v24, %v201_v18 }
 0x630   :  { %v226_v27 = vmul.f32 %v218_v25, %v215_v26 }
 0x632   :  { %227 = vadd.xlane.f32.xlu0 %v226_v27 }
 0x6b7   :  { %v210_v28 = vpop.xlane.xlu1 %209 }
 0x6b8   :  { %v211_v29 = vsel %vm207_vm4, %v210_v28, %v197_v21 }
 0x6b9   :  { %v222_v31 = vmul.f32 %v218_v25, %v211_v29 }
 0x6bb   :  { %v228_v32 = vpop.xlane.xlu0 %227  ;;  %223 = vadd.xlane.f32.xlu1 %v222_v31 }
 0x6bc   :  { %v229_v34 = vsel %vm221_vm5, %v228_v32, %v215_v26 }
 0x6bd   :  { %v240_v35 = vmul.f32 %v232_v33, %v229_v34 }
 0x6bf   :  { %241 = vadd.xlane.f32.xlu0 %v240_v35 }
 0x744   :  { %v224_v36 = vpop.xlane.xlu1 %223 }
 0x745   :  { %v225_v37 = vsel %vm221_vm5, %v224_v36, %v211_v29 }
 0x746   :  { %v236_v39 = vmul.f32 %v232_v33, %v225_v37 }
 0x748   :  { %v242_v40 = vpop.xlane.xlu0 %241  ;;  %237 = vadd.xlane.f32.xlu1 %v236_v39 }
 0x749   :  { %v243_v42 = vsel %vm235_vm6, %v242_v40, %v229_v34 }
 0x74a   :  { %v254_v44 = vmul.f32 %v246_v41, %v243_v42 }
 0x74c   :  { %255 = vadd.xlane.f32.xlu0 %v254_v44 }
 0x7d1   :  { %v238_v46 = vpop.xlane.xlu1 %237 }
 0x7d2   :  { %v239_v47 = vsel %vm235_vm6, %v238_v46, %v225_v37 }
 0x7d3   :  { %v250_v49 = vmul.f32 %v246_v41, %v239_v47 }
 0x7d5   :  { %v256_v50 = vpop.xlane.xlu0 %255  ;;  %251 = vadd.xlane.f32.xlu1 %v250_v49 }
 0x7d6   :  { %v257_v52 = vsel %vm249_vm7, %v256_v50, %v243_v42 }
 0x7d7   :  { %v268_v53 = vmul.f32 %v260_v51, %v257_v52 }
 0x7d9   :  { %269 = vadd.xlane.f32.xlu0 %v268_v53 }
 0x85e   :  { %v252_v54 = vpop.xlane.xlu1 %251 }
 0x85f   :  { %v253_v55 = vsel %vm249_vm7, %v252_v54, %v239_v47 }
 0x860   :  { %v264_v56 = vmul.f32 %v260_v51, %v253_v55 }
 0x862   :  { %v270_v57 = vpop.xlane.xlu0 %269  ;;  %265 = vadd.xlane.f32.xlu1 %v264_v56 }
 0x863   :  { %v271_v58 = vsel %vm263_vm8, %v270_v57, %v257_v52 }
 0x864   :  { %v278_v59 = vmul.f32 %v379_v45, %v271_v58 }
 0x866   :  { %v280_v60 = vsel %vm279_vm9, %v271_v58, %v278_v59 }
 0x867   :  { %316 = vst [vmem:[%s404_s1 + $0x8] sm:$0xff] %v280_v60 }
 0x8eb   :  { %v266_v61 = vpop.xlane.xlu1 %265 }
 0x8ec   :  { %v267_v62 = vsel %vm263_vm8, %v266_v61, %v253_v55 }
 0x8ed   :  { %v273_v63 = vmul.f32 %v359_v7, %v267_v62 }
 0x8ef   :  { %v275_v2 = vsel %vm274_vm10, %v267_v62, %v273_v63 }
 0x8f0   :  { %314 = vst [vmem:[%s404_s1] sm:$0xff] %v275_v2 }

// kernel: custom-call.16
= control target key start
LH: loop header
LB: loop body
LE: loop exit
PB: predicated region body
PF: predicated region fallthrough
CT: control target
= control target key end

     0   :  { %s2389_s30 = smov [#allocation0]   ;;  %s2738_s0 = inlined_call_operand.vmem [shape: f32[8,8], index: 0, kind: input, shape index: {}]   ;;  %s2739_s1 = inlined_call_operand.vmem [shape: f32[8,8], index: 1, kind: input, shape index: {}]   ;;  %s2740_s2 = inlined_call_operand.vmem [shape: f32[8,8], index: 2, kind: input, shape index: {}]   ;;  %s2741_s3 = inlined_call_operand.vmem [shape: f32[8,8], index: 3, kind: input, shape index: {}]   ;;  %s2742_s4 = inlined_call_operand.vmem [shape: f32[8], index: 4, kind: output, shape index: {0}]   ;;  %s2743_s5 = inlined_call_operand.vmem [shape: f32[8], index: 5, kind: output, shape index: {1}]   ;;  %s2744_s6 = inlined_call_operand.vmem [shape: f32[8,8], index: 6, kind: output, shape index: {2}]   ;;  %s2745_s7 = inlined_call_operand.vmem [shape: f32[8,8], index: 7, kind: output, shape index: {3}]   ;;  %s2746_s8 = inlined_call_operand.vmem [shape: f32[8,8], index: 8, kind: output, shape index: {4}]   ;;  %s2747_s9 = inlined_call_operand.vmem [shape: f32[8,8], index: 9, kind: output, shape index: {5}]  }
   0x1   :  { %s2393_s12 = smov %s2738_s0  }
   0x2 LB: > { %v58_v0 = vld [vmem:[%s2395_s12] sm:$0xff]  ;;  %s60_s12 = scalar_lea.vmem %s2395_s12, 8   ;;  %s2395_s12 = sphi %s2393_s12, %s60_s12   ;;  %s2391_s30 = sphi %s2389_s30, %s61_s30  }
   0x3   : > { %59 = vst [vmem:[%s2391_s30] sm:$0xff] %v58_v0  ;;  %s61_s30 = scalar_lea.vmem %s2391_s30, 8   ;;  %p55_p0 = scmp.gt.s32.totalorder %s60_s12, %s2738_s0 }
   0x4   :  { %s2397_s15 = smov (%p55_p0), [#allocation1]   ;;  %s2401_s18 = smov (%p55_p0), %s2739_s1  }
   0x5   :  { %57 = sbr.rel (!%p55_p0) target bundleno = 2 (0x2), region = 358 }
   0xa LB: > { %v121_v1 = vld [vmem:[%s2403_s18] sm:$0xff]  ;;  %s123_s18 = scalar_lea.vmem %s2403_s18, 8   ;;  %s2403_s18 = sphi %s2401_s18, %s123_s18   ;;  %s2399_s15 = sphi %s2397_s15, %s124_s15  }
   0xb   : > { %122 = vst [vmem:[%s2399_s15] sm:$0xff] %v121_v1  ;;  %s124_s15 = scalar_lea.vmem %s2399_s15, 8   ;;  %p118_p1 = scmp.gt.s32.totalorder %s123_s18, %s2739_s1 }
   0xc   :  { %s2405_s0 = smov (%p118_p1), [#allocation2]   ;;  %s2409_s23 = smov (%p118_p1), %s2740_s2  }
   0xd   :  { %120 = sbr.rel (!%p118_p1) target bundleno = 10 (0xa), region = 380 }
  0x12 LB: > { %v184_v2 = vld [vmem:[%s2411_s23] sm:$0xff]  ;;  %s186_s23 = scalar_lea.vmem %s2411_s23, 8   ;;  %s2411_s23 = sphi %s2409_s23, %s186_s23   ;;  %s2407_s0 = sphi %s2405_s0, %s187_s0  }
  0x13   : > { %185 = vst [vmem:[%s2407_s0] sm:$0xff] %v184_v2  ;;  %s187_s0 = scalar_lea.vmem %s2407_s0, 8   ;;  %p181_p2 = scmp.gt.s32.totalorder %s186_s23, %s2740_s2 }
  0x14   :  { %s2413_s1 = smov (%p181_p2), [#allocation3]   ;;  %s2417_s28 = smov (%p181_p2), %s2741_s3  }
  0x15   :  { %183 = sbr.rel (!%p181_p2) target bundleno = 18 (0x12), region = 402 }
  0x1a LB: > { %v247_v3 = vld [vmem:[%s2419_s28] sm:$0xff]  ;;  %s249_s28 = scalar_lea.vmem %s2419_s28, 8   ;;  %s2419_s28 = sphi %s2417_s28, %s249_s28   ;;  %s2415_s1 = sphi %s2413_s1, %s250_s1  }
  0x1b   : > { %248 = vst [vmem:[%s2415_s1] sm:$0xff] %v247_v3  ;;  %s250_s1 = scalar_lea.vmem %s2415_s1, 8   ;;  %p244_p3 = scmp.gt.s32.totalorder %s249_s28, %s2741_s3 }
  0x1c   :  { %s263_s2 = smov (%p244_p3), [#allocation12]  ;;  %v264_v4 = vld [vmem:[#allocation0] sm:$0xff] (%p244_p3)  ;;  %s266_s10 = smov (%p244_p3), [#allocation13]  ;;  %v267_v5 = vld [vmem:[#allocation1] sm:$0xff] (%p244_p3)  ;;  %v270_v6 = vld [vmem:[#allocation2] sm:$0xff] (%p244_p3)  ;;  %v280_v7 = vlaneseq (%p244_p3)  ;;  %v2461_v9 = vmov (%p244_p3), 0.0  }
  0x1d   :  { %246 = sbr.rel (!%p244_p3) target bundleno = 26 (0x1a), region = 424  ;;  %265 = vst [vmem:[%s263_s2] sm:$0xff] (%p244_p3), %v264_v4  ;;  %268 = vst [vmem:[%s266_s10] sm:$0xff] (%p244_p3), %v267_v5  ;;  %s269_s11 = smov (%p244_p3), [#allocation14] }
  0x1e   :  { %s272_s12 = smov (%p244_p3), [#allocation15]  ;;  %275 = vst [vmem:[#allocation8] sm:$0xff] (%p244_p3), %v2461_v9  ;;  %276 = vst [vmem:[#allocation9] sm:$0xff] (%p244_p3), %v2461_v9  ;;  %v2538_v10 = vand.u32 (%p244_p3), 127, %v280_v7  ;;  %v2540_v11 = vshrl.u32 (%p244_p3), %v280_v7, 7  ;;  %s279_s3 = smov (%p244_p3), [#allocation8] }
  0x1f   :  { %277 = vst [vmem:[#allocation10] sm:$0xff] (%p244_p3), %v2461_v9  ;;  %278 = vst [vmem:[#allocation11] sm:$0xff] (%p244_p3), %v2461_v9  ;;  %s292_s13 = smov (%p244_p3), [#allocation11]  ;;  %s1415_s14 = smov (%p244_p3), [#allocation12] }
  0x20   :  { %271 = vst [vmem:[%s269_s11] sm:$0xff] (%p244_p3), %v270_v6  ;;  %v282_v10 = vmov (%p244_p3), %v2538_v10  ;;  %v285_v11 = vmov (%p244_p3), %v2540_v11  ;;  %vm1419_vm2 = vcmp.lt.s32.totalorder (%p244_p3), %v2538_v10, 8  ;;  %s1432_s15 = smov (%p244_p3), [#allocation13]  ;;  %s1449_s16 = smov (%p244_p3), [#allocation14] }
  0x21   :  { %v295_v10 = vmov (%p244_p3), %v2538_v10  ;;  %v298_v11 = vmov (%p244_p3), %v2540_v11  ;;  %vm289_vm0 = vcmp.eq.s32.totalorder (%p244_p3), %v285_v11, %v282_v10  ;;  %s1466_s17 = smov (%p244_p3), [#allocation15] }
  0x22   :  { %v273_v8 = vld [vmem:[#allocation3] sm:$0xff]  ;;  %vm302_vm1 = vcmp.eq.s32.totalorder %v298_v11, %v295_v10  ;;  %v1411_v10 = vmov %v2538_v10  ;;  %v1414_v11 = vmov %v2540_v11 }
  0x23   :  { %274 = vst [vmem:[%s272_s12] sm:$0xff] %v273_v8  ;;  %vm1424_vm3 = vcmp.eq.s32.totalorder %v1414_v11, %v1411_v10  ;;  %v1462_v10 = vmov %v2538_v10  ;;  %v1431_v11 = vmov %v2540_v11 }
  0x24   :  { %v1421_v16 = vld [vmem:[%s1415_s14] sm:$0xff]  ;;  %v1428_v10 = vmov %v2538_v10  ;;  %v1465_v11 = vmov %v2540_v11 }
  0x25   :  { %v286_v12 = vld [vmem:[%s279_s3] sm:$0xff]  ;;  %v1422_v18 = vsel %vm1419_vm2, %v1421_v16, 0.0  ;;  %v1445_v10 = vmov %v2538_v10  ;;  %v1448_v11 = vmov %v2540_v11  ;;  %vm1475_vm4 = vcmp.eq.s32.totalorder %v1465_v11, %v1462_v10 }
  0x26   :  { %v299_v13 = vld [vmem:[%s292_s13] sm:$0xff]  ;;  %v290_v14 = vsel %vm289_vm0, 1.0, %v286_v12  ;;  %v1423_v22 = vmul.f32 %v1422_v18, %v1422_v18 }
  0x27   :  { %v303_v15 = vsel %vm302_vm1, 1.0, %v299_v13  ;;  %291 = vst [vmem:[%s279_s3] sm:$0xff] %v290_v14  ;;  %v1438_v17 = vld [vmem:[%s1432_s15] sm:$0xff] }
  0x28   :  { %304 = vst [vmem:[%s292_s13] sm:$0xff] %v303_v15  ;;  %v1439_v19 = vsel %vm1419_vm2, %v1438_v17, 0.0  ;;  %v1455_v20 = vld [vmem:[%s1449_s16] sm:$0xff]  ;;  %v1425_v29 = vsel %vm1424_vm3, 0.0, %v1423_v22 }
  0x29   :  { %v1440_v23 = vmul.f32 %v1439_v19, %v1439_v19  ;;  %v1456_v24 = vsel %vm1419_vm2, %v1455_v20, 0.0 }
  0x2a   :  { %v1472_v21 = vld [vmem:[%s1466_s17] sm:$0xff]  ;;  %v1457_v26 = vmul.f32 %v1456_v24, %v1456_v24 }
  0x2b   :  { %v1473_v25 = vsel %vm1419_vm2, %v1472_v21, 0.0  ;;  %v1442_v27 = vadd.f32 %v1440_v23, %v1423_v22  ;;  %v1441_v30 = vadd.f32 %v1440_v23, %v1425_v29 }
  0x2c   :  { %v1474_v28 = vmul.f32 %v1473_v25, %v1473_v25 }
  0x2d   :  { %v1459_v31 = vadd.f32 %v1457_v26, %v1442_v27  ;;  %v1458_v32 = vadd.f32 %v1457_v26, %v1441_v30 }
  0x2e   :  { %v1476_v33 = vsel %vm1475_vm4, 0.0, %v1474_v28 }
  0x2f   :  { %v1478_v34 = vadd.f32 %v1474_v28, %v1459_v31  ;;  %v1477_v35 = vadd.f32 %v1476_v33, %v1458_v32 }
  0x31   :  { %1479 = vadd.xlane.f32.xlu0 %v1478_v34 }
  0x35   :  { %1487 = vadd.xlane.f32.xlu0 %v1477_v35 }
  0xba   :  { %v1480_v36 = vpop.xlane.xlu0 %1479 }
  0xbb   :  { %v1481_v37 = vrot.slane %v1480_v36, 4 }
  0xbd   :  { %v1482_v38 = vadd.f32 %v1481_v37, %v1480_v36 }
  0xbe   :  { %v1488_v39 = vpop.xlane.xlu0 %1487 }
  0xbf   :  { %v1483_v40 = vrot.slane %v1482_v38, 2  ;;  %v1489_v41 = vrot.slane %v1488_v39, 4 }
  0xc1   :  { %v1490_v42 = vadd.f32 %v1489_v41, %v1488_v39  ;;  %v1484_v43 = vadd.f32 %v1483_v40, %v1482_v38 }
  0xc3   :  { %v1491_v44 = vrot.slane %v1490_v42, 2  ;;  %v1485_v46 = vrot.slane %v1484_v43, 1 }
  0xc5   :  { %v1492_v45 = vadd.f32 %v1491_v44, %v1490_v42  ;;  %v1486_v49 = vadd.f32 %v1485_v46, %v1484_v43 }
  0xc7   :  { %v1493_v47 = vrot.slane %v1492_v45, 1 }
  0xc9   :  { %v1494_v48 = vadd.f32 %v1493_v47, %v1492_v45 }
  0xcb   :  { %1670 = vpush %v1494_v48 }
  0xcc   :  { %1672 = vpush %v1486_v49 }
  0xfc   :  { %s1671_s18 = spop %1670 }
  0xfd   :  { %s1673_s19 = spop %1672 }
  0xfe   :  { %s1497_s20 = smul.f32 1e-10, %s1673_s19 }
 0x100   :  { %p1498_p4 = scmp.le.f32.partialorder %s1671_s18, %s1497_s20 }
 0x101   :  { %s2564_s0 = smov (!%p1498_p4), 0  }
 0x102   :  { %1501 = sbr.rel (%p1498_p4) target bundleno = 940 (0x3ac), region = 440 }
 0x107 LB: > { %s2569_s21 = smov 0   ;;  %s2423_s0 = sphi %s2564_s0, %s2748_s0  }
 0x108 LB: >> { %s409_s22 = smov [#allocation12]  ;;  %v413_v10 = vmov %v2538_v10  ;;  %v416_v11 = vmov %v2540_v11  ;;  %s429_s23 = smov [#allocation13]  ;;  %vm732_vm14 = vcmp.eq.s32.totalorder %v2540_v11, 0  ;;  %vm744_vm15 = vcmp.eq.s32.totalorder %v2540_v11, 7  ;;  %s2427_s21 = sphi %s2569_s21, %s408_s21  }
 0x109   : >> { %v433_v10 = vmov %v2538_v10  ;;  %v436_v11 = vmov %v2540_v11  ;;  %v417_v50 = vld [vmem:[%s409_s22] sm:$0xff]  ;;  %vm420_vm5 = vcmp.eq.s32.totalorder %v416_v11, %v413_v10  ;;  %s449_s24 = smov [#allocation15]  ;;  %s410_s25 = smov [#allocation16] }
 0x10a   : >> { %vm440_vm6 = vcmp.eq.s32.totalorder %v436_v11, %v433_v10  ;;  %v453_v10 = vmov %v2538_v10  ;;  %v456_v11 = vmov %v2540_v11  ;;  %v421_v51 = vsel %vm420_vm5, %v417_v50, 0.0  ;;  %v437_v52 = vld [vmem:[%s429_s23] sm:$0xff]  ;;  %s430_s1 = smov [#allocation17]  ;;  %s450_s26 = smov [#allocation18] }
 0x10b   : >> { %vm460_vm7 = vcmp.eq.s32.totalorder %v456_v11, %v453_v10  ;;  %v422_v53 = vrot.slane %v421_v51, 4  ;;  %v441_v54 = vsel %vm440_vm6, %v437_v52, 0.0  ;;  %v457_v55 = vld [vmem:[%s449_s24] sm:$0xff]  ;;  %s473_s27 = smov [#allocation17]  ;;  %s471_s28 = smov [#allocation16]  ;;  %v522_v10 = vmov %v2538_v10 }
 0x10c   : >> { %v442_v56 = vrot.slane %v441_v54, 4  ;;  %v461_v57 = vsel %vm460_vm7, %v457_v55, 0.0  ;;  %s475_s29 = smov [#allocation18]  ;;  %s510_s30 = smov [#allocation19]  ;;  %v525_v11 = vmov %v2540_v11  ;;  %v537_v10 = vmov %v2538_v10 }
 0x10d   : >> { %v423_v58 = vadd.f32 %v422_v53, %v421_v51  ;;  %v462_v59 = vrot.slane %v461_v57, 4  ;;  %s512_s2 = smov [#allocation20]  ;;  %s469_s10 = smov [#allocation21]  ;;  %v540_v11 = vmov %v2540_v11  ;;  %vm527_vm12 = vcmp.eq.s32.totalorder %v525_v11, %v522_v10 }
 0x10e   : >> { %v443_v60 = vadd.f32 %v442_v56, %v441_v54  ;;  %s470_s11 = smov [#allocation22]  ;;  %s514_s10 = smov %s469_s10  ;;  %vm542_vm13 = vcmp.eq.s32.totalorder %v540_v11, %v537_v10  ;;  %v635_v10 = vmov %v2538_v10  ;;  %v638_v11 = vmov %v2540_v11 }
 0x10f   : >> { %v424_v61 = vrot.slane %v423_v58, 2  ;;  %v463_v62 = vadd.f32 %v462_v59, %v461_v57  ;;  %s516_s11 = smov %s470_s11  ;;  %s518_s12 = smov [#allocation21]  ;;  %v608_v10 = vmov %v2538_v10  ;;  %v611_v11 = vmov %v2540_v11 }
 0x110   : >> { %v444_v63 = vrot.slane %v443_v60, 2  ;;  %s533_s3 = smov [#allocation22]  ;;  %s531_s13 = smov [#allocation23]  ;;  %v649_v10 = vmov %v2538_v10  ;;  %v652_v11 = vmov %v2540_v11  ;;  %vm642_vm0 = vcmp.eq.s32.totalorder %v638_v11, %v635_v10 }
 0x111   : >> { %v425_v0 = vadd.f32 %v424_v61, %v423_v58  ;;  %v464_v1 = vrot.slane %v463_v62, 2  ;;  %s548_s14 = smov [#allocation23]  ;;  %s2584_s15 = smov [#allocation12]  ;;  %v622_v10 = vmov %v2538_v10  ;;  %v625_v11 = vmov %v2540_v11 }
 0x112   : >> { %v445_v2 = vadd.f32 %v444_v63, %v443_v60  ;;  %s546_s16 = smov [#allocation24]  ;;  %s2586_s17 = smov [#allocation13]  ;;  %v556_v49 = vld [vmem:[%s2584_s15] sm:$0xff]  ;;  %vm616_vm1 = vcmp.eq.s32.totalorder %v611_v11, %v608_v10  ;;  %vm657_vm3 = vcmp.eq.s32.totalorder %v652_v11, %v649_v10  ;;  %vm629_vm4 = vcmp.eq.s32.totalorder %v625_v11, %v622_v10 }
 0x113   : >> { %v426_v3 = vrot.slane %v425_v0, 1  ;;  %v465_v4 = vadd.f32 %v464_v1, %v463_v62  ;;  %s2588_s18 = smov [#allocation15]  ;;  %s772_s19 = smov [#allocation23]  ;;  %v557_v50 = vld [vmem:[%s2586_s17] sm:$0xff]  ;;  %vm671_vm5 = vcmp.eq.s32.totalorder %v2538_v10, 0  ;;  %vm675_vm6 = vcmp.eq.s32.totalorder %v2538_v10, 1 }
 0x114   : >> { %v446_v5 = vrot.slane %v445_v2, 1  ;;  %s2590_s20 = smov [#allocation8]  ;;  %s2592_s22 = smov [#allocation9]  ;;  %v559_v51 = vld [vmem:[%s2588_s18] sm:$0xff]  ;;  %vm688_vm7 = vcmp.eq.s32.totalorder %v2538_v10, 7 }
 0x115   : >> { %v427_v6 = vadd.f32 %v426_v3, %v425_v0  ;;  %v466_v7 = vrot.slane %v465_v4, 1  ;;  %s2594_s23 = smov [#allocation10]  ;;  %s2597_s24 = smov [#allocation11]  ;;  %v780_v52 = vld [vmem:[%s2590_s20] sm:$0xff] }
 0x116   : >> { %v447_v8 = vadd.f32 %v446_v5, %v445_v2  ;;  %v781_v53 = vld [vmem:[%s2592_s22] sm:$0xff]  ;;  %s408_s21 = sadd.s32 1, %s2427_s21  }
 0x117   : >> { %428 = vst [vmem:[%s410_s25] sm:$0x1] %v427_v6  ;;  %v467_v9 = vadd.f32 %v466_v7, %v465_v4  ;;  %s2599_s25 = smov [#allocation14]  ;;  %v782_v56 = vld [vmem:[%s2594_s23] sm:$0xff]  ;;  %p405_p5 = scmp.ge.s32.totalorder %s408_s21, 15  }
 0x118   : >> { %448 = vst [vmem:[%s430_s1] sm:$0x1] %v447_v8  ;;  %v783_v57 = vld [vmem:[%s2597_s24] sm:$0xff]  ;;  %s550_s1 = smov [#allocation24]  ;;  %v309_v10 = vmov (%p405_p5), %v2538_v10  ;;  %v312_v11 = vmov (%p405_p5), %v2540_v11 }
 0x119   : >> { %468 = vst [vmem:[%s450_s26] sm:$0x1] %v467_v9  ;;  %s774_s26 = smov [#allocation24]  ;;  %v558_v58 = vld [vmem:[%s2599_s25] sm:$0xff]  ;;  %v362_v10 = vmov (%p405_p5), %v2538_v10 }
 0x11e   : >> { %v472_v14 = vld [vmem:[%s471_s28] sm:$0xff]  ;;  %s801_s28 = smov [#allocation10] }
 0x11f   : >> { %v474_v12 = vld [vmem:[%s473_s27] sm:$0xff]  ;;  %v495_v29 = vand.u32 2147483647, %v472_v14  ;;  %s800_s27 = smov [#allocation8] }
 0x120   : >> { %v478_v13 = vmul.f32 2.0, %v474_v12  ;;  %v476_v15 = vld [vmem:[%s475_s29] sm:$0xff]  ;;  %v496_v32 = vand.u32 2147483647, %v474_v12  ;;  %s576_s29 = smov [#allocation21] }
 0x121   : >> { %v477_v16 = vsub.f32 %v476_v15, %v472_v14  ;;  %v497_v30 = vand.u32 2147483647, %v476_v15 }
 0x122   : >> { %2149 = vrcp.f32 %v478_v13 }
 0x123   : >> { %v498_v31 = vmin.f32 %v495_v29, %v497_v30 }
 0x125   : >> { %v499_v33 = vmul.f32 1.1920929e-08, %v498_v31 }
 0x127   : >> { %vm500_vm11 = vcmp.le.f32.partialorder %v496_v32, %v499_v33 }
 0x12f   : >> { %v2150_v17 = vpop.eup %2149 }
 0x130   : >> { %v480_v18 = vmul.f32 %v2150_v17, %v477_v16 }
 0x132   : >> { %v482_v19 = vmul.f32 %v480_v18, %v480_v18  ;;  %vm481_vm10 = vcmp.ge.f32.partialorder %v480_v18, 0.0 }
 0x134   : >> { %v483_v20 = vadd.f32 1.0, %v482_v19 }
 0x136   : >> { %2151 = vrsqrt.f32 %v483_v20  ;;  %vm486_vm8 = vcmp.eq.f32.partialorder %v483_v20, inf  ;;  %v489_v22 = vand.u32 2147483648, %v483_v20  ;;  %vm488_vm9 = vcmp.eq.f32.partialorder %v483_v20, 0.0 }
 0x143   : >> { %v2152_v21 = vpop.eup %2151 }
 0x144   : >> { %v485_v23 = vmul.f32 %v2152_v21, %v483_v20 }
 0x146   : >> { %v487_v24 = vsel %vm486_vm8, %v483_v20, %v485_v23  ;;  %vm324_vm8 = vcmp.eq.s32.totalorder (%p405_p5), %v312_v11, %v309_v10  ;;  %v365_v11 = vmov (%p405_p5), %v2540_v11  ;;  %v328_v10 = vmov (%p405_p5), %v2538_v10 }
 0x147   : >> { %v490_v25 = vsel %vm488_vm9, %v489_v22, %v487_v24  ;;  %v331_v11 = vmov (%p405_p5), %v2540_v11  ;;  %v345_v10 = vmov (%p405_p5), %v2538_v10  ;;  %vm377_vm9 = vcmp.eq.s32.totalorder (%p405_p5), %v365_v11, %v362_v10 }
 0x148   : >> { %v491_v26 = vxor.u32 2147483648, %v490_v25  ;;  %v348_v11 = vmov (%p405_p5), %v2540_v11 }
 0x14a   : >> { %v492_v27 = vsel %vm481_vm10, %v490_v25, %v491_v26 }
 0x14b   : >> { %v493_v28 = vadd.f32 %v492_v27, %v480_v18 }
 0x14d   : >> { %2153 = vrcp.f32 %v493_v28 }
 0x15a   : >> { %v2154_v34 = vpop.eup %2153 }
 0x15b   : >> { %v501_v35 = vsel %vm500_vm11, 0.0, %v2154_v34 }
 0x15c   : >> { %v502_v36 = vmul.f32 %v501_v35, %v501_v35  ;;  %v506_v37 = vmul.f32 %v501_v35, %v474_v12 }
 0x15e   : >> { %v503_v38 = vadd.f32 1.0, %v502_v36  ;;  %v507_v39 = vsub.f32 %v472_v14, %v506_v37  ;;  %v509_v40 = vadd.f32 %v506_v37, %v476_v15 }
 0x160   : >> { %2155 = vrsqrt.f32 %v503_v38  ;;  %511 = vst [vmem:[%s510_s30] sm:$0xff] %v507_v39  ;;  %513 = vst [vmem:[%s512_s2] sm:$0xff] %v509_v40  ;;  %s578_s30 = smov [#allocation22]  ;;  %s2616_s2 = smov [#allocation9] }
 0x16d   : >> { %v2156_v41 = vpop.eup %2155 }
 0x16e   : >> { %515 = vst [vmem:[%s514_s10] sm:$0xff] %v2156_v41  ;;  %v505_v42 = vmul.f32 %v2156_v41, %v501_v35  ;;  %s2618_s10 = smov [#allocation11] }
 0x170   : >> { %517 = vst [vmem:[%s516_s11] sm:$0xff] %v505_v42  ;;  %s2622_s11 = smov [#allocation14] }
 0x175   : >> { %v519_v43 = vld [vmem:[%s518_s12] ss:$0 sm:$0xff]  ;;  %s2624_s12 = smov [#allocation15] }
 0x176   : >> { %v528_v44 = vsel %vm527_vm12, %v519_v43, 0.0  ;;  %v577_v23 = vld [vmem:[%s576_s29] ss:$0 sm:$0xff]  ;;  %s749_s29 = smov [#allocation15] }
 0x177   : >> { %529 = vadd.xlane.f32.xlu0 %v528_v44  ;;  %v534_v45 = vld [vmem:[%s533_s3] ss:$0 sm:$0xff]  ;;  %s2626_s3 = smov [#allocation12] }
 0x178   : >> { %v543_v46 = vsel %vm542_vm13, %v534_v45, 0.0  ;;  %v579_v24 = vld [vmem:[%s578_s30] ss:$0 sm:$0xff]  ;;  %s848_s30 = sadd.s32 (%p405_p5), 1, %s2423_s0  }
 0x179   : > { %p401_p6 = scmp.ge.s32.totalorder (%p405_p5), %s848_s30, 15  ;;  %s2748_s0 = smov (%p405_p5), %s848_s30 }
 0x17b   : >> { %544 = vadd.xlane.f32.xlu0 %v543_v46 }
 0x200   : >> { %v530_v47 = vpop.xlane.xlu0 %529 }
 0x201   : >> { %532 = vst [vmem:[%s531_s13] sm:$0xff] %v530_v47  ;;  %s2628_s13 = smov [#allocation13] }
 0x204   : >> { %v545_v48 = vpop.xlane.xlu0 %544 }
 0x205   : >> { %547 = vst [vmem:[%s546_s16] sm:$0xff] %v545_v48  ;;  %s632_s16 = smov [#allocation14] }
 0x208   : >> { %v549_v54 = vld [vmem:[%s548_s14] sm:$0xff]  ;;  %s605_s14 = smov [#allocation19] }
 0x209   : >> { %v773_v55 = vld [vmem:[%s772_s19] sm:$0xff]  ;;  %v560_v59 = vmul.f32 %v556_v49, %v549_v54  ;;  %v563_v60 = vmul.f32 %v557_v50, %v549_v54  ;;  %v570_v61 = vmul.f32 %v559_v51, %v549_v54  ;;  %v567_v4 = vmul.f32 %v558_v58, %v549_v54  ;;  %s619_s19 = smov [#allocation13] }
 0x20a   : >> { %v784_v62 = vmul.f32 %v780_v52, %v773_v55  ;;  %v787_v63 = vmul.f32 %v781_v53, %v773_v55  ;;  %v791_v0 = vmul.f32 %v782_v56, %v773_v55  ;;  %v794_v1 = vmul.f32 %v783_v57, %v773_v55  ;;  %v612_v55 = vld [vmem:[%s605_s14] ss:$0 sm:$0xff] }
 0x20c   : >> { %v551_v2 = vld [vmem:[%s550_s1] sm:$0xff]  ;;  %s2665_s1 = smov [#allocation15] }
 0x20d   : >> { %v775_v3 = vld [vmem:[%s774_s26] sm:$0xff]  ;;  %v564_v5 = vmul.f32 %v559_v51, %v551_v2  ;;  %v566_v6 = vmul.f32 %v556_v49, %v551_v2  ;;  %v569_v7 = vmul.f32 %v557_v50, %v551_v2  ;;  %v561_v14 = vmul.f32 %v558_v58, %v551_v2  ;;  %s724_s26 = smov [#allocation12] }
 0x20e   : >> { %v785_v8 = vmul.f32 %v782_v56, %v775_v3  ;;  %v788_v9 = vmul.f32 %v783_v57, %v775_v3  ;;  %v790_v12 = vmul.f32 %v780_v52, %v775_v3  ;;  %v793_v13 = vmul.f32 %v781_v53, %v775_v3 }
 0x20f   : >> { %v565_v15 = vsub.f32 %v563_v60, %v564_v5  ;;  %v571_v16 = vadd.f32 %v570_v61, %v569_v7  ;;  %v568_v18 = vadd.f32 %v567_v4, %v566_v6  ;;  %v562_v22 = vsub.f32 %v560_v59, %v561_v14 }
 0x210   : >> { %v786_v17 = vsub.f32 %v784_v62, %v785_v8  ;;  %v789_v19 = vsub.f32 %v787_v63, %v788_v9  ;;  %v792_v20 = vadd.f32 %v791_v0, %v790_v12  ;;  %v795_v21 = vadd.f32 %v794_v1, %v793_v13 }
 0x211   : >> { %573 = vst [vmem:[%s2586_s17] sm:$0xff] %v565_v15  ;;  %575 = vst [vmem:[%s2588_s18] sm:$0xff] %v571_v16  ;;  %s604_s17 = smov [#allocation12]  ;;  %s645_s18 = smov [#allocation15] }
 0x212   : >> { %796 = vst [vmem:[%s2590_s20] sm:$0xff] %v786_v17  ;;  %574 = vst [vmem:[%s2599_s25] sm:$0xff] %v568_v18  ;;  %s2662_s20 = smov [#allocation14]  ;;  %s2463_s25 = smov 127  }
 0x213   : >> { %797 = vst [vmem:[%s2592_s22] sm:$0xff] %v789_v19  ;;  %798 = vst [vmem:[%s2594_s23] sm:$0xff] %v792_v20  ;;  %s660_s22 = smov [#allocation12]  ;;  %s2462_s23 = smov 1  }
 0x214   : >> { %799 = vst [vmem:[%s2597_s24] sm:$0xff] %v795_v21  ;;  %572 = vst [vmem:[%s2584_s15] sm:$0xff] %v562_v22  ;;  %s646_s15 = smov [#allocation20]  ;;  %s661_s24 = smov [#allocation13] }
 0x215   : >> { %v653_v56 = vld [vmem:[%s646_s15] ss:$0 sm:$0xff] }
 0x218   : >> { %v587_v39 = vld [vmem:[%s2624_s12] sm:$0xff] }
 0x219   : >> { %v802_v25 = vld [vmem:[%s800_s27] ss:$0 sm:$0xff]  ;;  %v1641_v27 = vld [vmem:[%s800_s27 + $0x7] ss:$0 sm:$0xff]  ;;  %v595_v42 = vmul.f32 %v587_v39, %v579_v24  ;;  %v598_v46 = vmul.f32 %v587_v39, %v577_v23 }
 0x21a   : >> { %v1640_v26 = vld [vmem:[%s800_s27 - $0x1] sm:$0xfe]  ;;  %v1645_v34 = vld [vmem:[%s2616_s2 + $0x7] ss:$0 sm:$0xff] }
 0x21b   : >> { %v809_v28 = vsel %vm732_vm14, %v802_v25, %v1640_v26  ;;  %v813_v29 = vld [vmem:[%s801_s28] ss:$0 sm:$0xff]  ;;  %v1643_v30 = vld [vmem:[%s801_s28 + $0x1] sm:$0x7f] }
 0x21c   : >> { %v826_v31 = vld [vmem:[%s2616_s2] ss:$0 sm:$0xff]  ;;  %812 = vst [vmem:[%s800_s27] sm:$0xff] %v809_v28  ;;  %v821_v32 = vsel %vm744_vm15, %v1641_v27, %v1643_v30  ;;  %v1647_v37 = vld [vmem:[%s2618_s10 + $0x1] sm:$0x7f] }
 0x21d   : >> { %v1644_v33 = vld [vmem:[%s2616_s2 - $0x1] sm:$0xfe]  ;;  %1642 = vst [vmem:[%s800_s27 + $0x1] sm:$0x1] %v813_v29  ;;  %823 = vst [vmem:[%s801_s28] sm:$0xff] %v821_v32  ;;  %v845_v40 = vsel %vm744_vm15, %v1645_v34, %v1647_v37  ;;  %s748_s27 = smov [#allocation13]  ;;  %s725_s28 = smov [#allocation14] }
 0x21e   : >> { %v837_v35 = vld [vmem:[%s2618_s10] ss:$0 sm:$0xff]  ;;  %v833_v36 = vsel %vm732_vm14, %v826_v31, %v1644_v33 }
 0x21f   : >> { %v586_v38 = vld [vmem:[%s2622_s11] sm:$0xff]  ;;  %836 = vst [vmem:[%s2616_s2] sm:$0xff] %v833_v36  ;;  %847 = vst [vmem:[%s2618_s10] sm:$0xff] %v845_v40  ;;  %s332_s10 = smov (%p405_p5), [#allocation13] }
 0x220   : >> { %v594_v41 = vmul.f32 %v586_v38, %v577_v23  ;;  %v597_v43 = vmul.f32 %v586_v38, %v579_v24  ;;  %v584_v44 = vld [vmem:[%s2626_s3] sm:$0xff]  ;;  %1646 = vst [vmem:[%s2616_s2 + $0x1] sm:$0x1] %v837_v35  ;;  %s313_s2 = smov (%p405_p5), [#allocation12] }
 0x221   : >> { %v585_v45 = vld [vmem:[%s2628_s13] sm:$0xff]  ;;  %v588_v47 = vmul.f32 %v584_v44, %v577_v23  ;;  %v591_v49 = vmul.f32 %v584_v44, %v579_v24 }
 0x222   : >> { %v589_v48 = vmul.f32 %v585_v45, %v579_v24  ;;  %v596_v50 = vsub.f32 %v594_v41, %v595_v42  ;;  %v592_v51 = vmul.f32 %v585_v45, %v577_v23  ;;  %v599_v52 = vadd.f32 %v598_v46, %v597_v43 }
 0x224   : >> { %v590_v53 = vsub.f32 %v588_v47, %v589_v48  ;;  %602 = vst [vmem:[%s2622_s11] sm:$0xff] %v596_v50  ;;  %v593_v54 = vadd.f32 %v592_v51, %v591_v49  ;;  %603 = vst [vmem:[%s2624_s12] sm:$0xff] %v599_v52  ;;  %s349_s11 = smov (%p405_p5), [#allocation14]  ;;  %s366_s12 = smov (%p405_p5), [#allocation15] }
 0x226   : >> { %600 = vst [vmem:[%s2626_s3] sm:$0xff] %v590_v53  ;;  %601 = vst [vmem:[%s2628_s13] sm:$0xff] %v593_v54 }
 0x22b   : >> { %v639_v57 = vld [vmem:[%s632_s16] sm:$0xff] }
 0x22c   : >> { %v643_v58 = vsel %vm642_vm0, 0.0, %v639_v57  ;;  %v654_v60 = vld [vmem:[%s645_s18] sm:$0xff] }
 0x22d   : >> { %v613_v59 = vld [vmem:[%s604_s17] sm:$0xff]  ;;  %644 = vst [vmem:[%s632_s16] sm:$0xff] %v643_v58  ;;  %v658_v63 = vsel %vm657_vm3, %v653_v56, %v654_v60 }
 0x22e   : >> { %v617_v61 = vsel %vm616_vm1, %v612_v55, %v613_v59  ;;  %v626_v62 = vld [vmem:[%s619_s19] sm:$0xff]  ;;  %659 = vst [vmem:[%s645_s18] sm:$0xff] %v658_v63 }
 0x22f   : >> { %618 = vst [vmem:[%s604_s17] sm:$0xff] %v617_v61  ;;  %v630_v0 = vsel %vm629_vm4, 0.0, %v626_v62 }
 0x230   : >> { %631 = vst [vmem:[%s619_s19] sm:$0xff] %v630_v0 }
 0x234   : >> { %v698_v1 = vld [vmem:[%s2662_s20] sm:$0xff] }
 0x235   : >> { %699 = vrot.lane.b32.xlu0 %v698_v1, %s2462_s23  ;;  %v694_v4 = vld [vmem:[%s2665_s1] sm:$0xff] }
 0x236   : >> { %v666_v2 = vld [vmem:[%s660_s22] sm:$0xff] }
 0x237   : >> { %667 = vrot.lane.b32.xlu1 %v666_v2, %s2462_s23  ;;  %v662_v3 = vld [vmem:[%s661_s24] sm:$0xff] }
 0x23b   : >> { %663 = vrot.lane.b32.xlu1 %v662_v3, %s2462_s23 }
 0x23f   : >> { %684 = vrot.lane.b32.xlu1 %v662_v3, %s2463_s25 }
 0x243   : >> { %695 = vrot.lane.b32.xlu1 %v694_v4, %s2462_s23 }
 0x247   : >> { %716 = vrot.lane.b32.xlu1 %v694_v4, %s2463_s25 }
 0x2a7   : >> { %v700_v13 = vpop.permute.xlu0 %699 }
 0x2a8   : >> { %v704_v15 = vsel %vm671_vm5, %v698_v1, %v700_v13 }
 0x2a9   : >> { %v668_v5 = vpop.permute.xlu1 %667 }
 0x2aa   : >> { %v672_v6 = vsel %vm671_vm5, %v666_v2, %v668_v5 }
 0x2ad   : >> { %v664_v7 = vpop.permute.xlu1 %663 }
 0x2ae   : >> { %v676_v8 = vsel %vm675_vm6, %v664_v7, %v672_v6 }
 0x2af   : >> { %v682_v9 = vsel %vm1419_vm2, %v676_v8, 0.0 }
 0x2b0   : >> { %690 = vst [vmem:[%s660_s22] sm:$0xff] %v682_v9 }
 0x2b1   : >> { %v685_v12 = vpop.permute.xlu1 %684 }
 0x2b2   : >> { %v689_v14 = vsel %vm688_vm7, %v666_v2, %v685_v12 }
 0x2b3   : >> { %691 = vst [vmem:[%s661_s24] sm:$0xff] %v689_v14 }
 0x2b5   : >> { %v696_v16 = vpop.permute.xlu1 %695 }
 0x2b6   : >> { %v708_v17 = vsel %vm675_vm6, %v696_v16, %v704_v15 }
 0x2b7   : >> { %v726_v18 = vld [vmem:[%s724_s26] ss:$0 sm:$0xff]  ;;  %v1633_v20 = vld [vmem:[%s724_s26 + $0x7] ss:$0 sm:$0xff]  ;;  %v714_v22 = vsel %vm1419_vm2, %v708_v17, 0.0 }
 0x2b8   : >> { %v1632_v19 = vld [vmem:[%s724_s26 - $0x1] sm:$0xfe]  ;;  %722 = vst [vmem:[%s2662_s20] sm:$0xff] %v714_v22 }
 0x2b9   : >> { %v733_v21 = vsel %vm732_vm14, %v726_v18, %v1632_v19  ;;  %v717_v23 = vpop.permute.xlu1 %716 }
 0x2ba   : >> { %736 = vst [vmem:[%s724_s26] sm:$0xff] %v733_v21  ;;  %v750_v24 = vld [vmem:[%s748_s27] ss:$0 sm:$0xff]  ;;  %v1637_v26 = vld [vmem:[%s748_s27 + $0x7] ss:$0 sm:$0xff]  ;;  %v721_v27 = vsel %vm688_vm7, %v698_v1, %v717_v23 }
 0x2bb   : >> { %v1636_v25 = vld [vmem:[%s748_s27 - $0x1] sm:$0xfe]  ;;  %723 = vst [vmem:[%s2665_s1] sm:$0xff] %v721_v27 }
 0x2bc   : >> { %v757_v28 = vsel %vm732_vm14, %v750_v24, %v1636_v25 }
 0x2bd   : >> { %760 = vst [vmem:[%s748_s27] sm:$0xff] %v757_v28 }
 0x2bf   : >> { %v737_v29 = vld [vmem:[%s725_s28] ss:$0 sm:$0xff]  ;;  %v1635_v30 = vld [vmem:[%s725_s28 + $0x1] sm:$0x7f] }
 0x2c0   : >> { %1634 = vst [vmem:[%s724_s26 + $0x1] sm:$0x1] %v737_v29  ;;  %v745_v31 = vsel %vm744_vm15, %v1633_v20, %v1635_v30 }
 0x2c1   : >> { %747 = vst [vmem:[%s725_s28] sm:$0xff] %v745_v31 }
 0x2c2   : >> { %v761_v32 = vld [vmem:[%s749_s29] ss:$0 sm:$0xff]  ;;  %v1639_v33 = vld [vmem:[%s749_s29 + $0x1] sm:$0x7f] }
 0x2c3   : >> { %1638 = vst [vmem:[%s748_s27 + $0x1] sm:$0x1] %v761_v32  ;;  %v769_v34 = vsel %vm744_vm15, %v1637_v26, %v1639_v33 }
 0x2c4   : >> { %771 = vst [vmem:[%s749_s29] sm:$0xff] %v769_v34  ;;  %407 = sbr.rel (!%p405_p5) target bundleno = 264 (0x108), region = 435 }
 0x2c7   : > { %v319_v35 = vld [vmem:[%s313_s2] sm:$0xff] (%p405_p5) }
 0x2c8   : > { %v320_v37 = vsel (%p405_p5), %vm1419_vm2, %v319_v35, 0.0  ;;  %v355_v39 = vld [vmem:[%s349_s11] sm:$0xff] (%p405_p5) }
 0x2c9   : > { %v321_v41 = vmul.f32 %v320_v37, %v320_v37  ;;  %v356_v43 = vsel %vm1419_vm2, %v355_v39, 0.0 }
 0x2ca   : > { %v338_v36 = vld [vmem:[%s332_s10] sm:$0xff]  ;;  %v357_v45 = vmul.f32 %v356_v43, %v356_v43 }
 0x2cb   : > { %v339_v38 = vsel %vm1419_vm2, %v338_v36, 0.0  ;;  %v372_v40 = vld [vmem:[%s366_s12] sm:$0xff]  ;;  %v325_v48 = vsel %vm324_vm8, 0.0, %v321_v41 }
 0x2cc   : > { %v340_v42 = vmul.f32 %v339_v38, %v339_v38  ;;  %v373_v44 = vsel %vm1419_vm2, %v372_v40, 0.0 }
 0x2cd   : > { %v374_v47 = vmul.f32 %v373_v44, %v373_v44 }
 0x2ce   : > { %v342_v46 = vadd.f32 %v340_v42, %v321_v41  ;;  %v341_v49 = vadd.f32 %v340_v42, %v325_v48 }
 0x2cf   : > { %v378_v52 = vsel %vm377_vm9, 0.0, %v374_v47 }
 0x2d0   : > { %v359_v50 = vadd.f32 %v357_v45, %v342_v46  ;;  %v358_v51 = vadd.f32 %v357_v45, %v341_v49 }
 0x2d2   : > { %v380_v53 = vadd.f32 %v374_v47, %v359_v50  ;;  %v379_v54 = vadd.f32 %v378_v52, %v358_v51 }
 0x2d4   : > { %381 = vadd.xlane.f32.xlu0 %v380_v53 }
 0x2d8   : > { %389 = vadd.xlane.f32.xlu0 %v379_v54 }
 0x35d   : > { %v382_v55 = vpop.xlane.xlu0 %381 }
 0x35e   : > { %v383_v56 = vrot.slane %v382_v55, 4 }
 0x360   : > { %v384_v57 = vadd.f32 %v383_v56, %v382_v55 }
 0x361   : > { %v390_v58 = vpop.xlane.xlu0 %389 }
 0x362   : > { %v385_v59 = vrot.slane %v384_v57, 2  ;;  %v391_v60 = vrot.slane %v390_v58, 4 }
 0x364   : > { %v392_v61 = vadd.f32 %v391_v60, %v390_v58  ;;  %v386_v62 = vadd.f32 %v385_v59, %v384_v57 }
 0x366   : > { %v393_v63 = vrot.slane %v392_v61, 2  ;;  %v387_v1 = vrot.slane %v386_v62, 1 }
 0x368   : > { %v394_v0 = vadd.f32 %v393_v63, %v392_v61  ;;  %v388_v4 = vadd.f32 %v387_v1, %v386_v62 }
 0x36a   : > { %v395_v2 = vrot.slane %v394_v0, 1 }
 0x36c   : > { %v396_v3 = vadd.f32 %v395_v2, %v394_v0 }
 0x36e   : > { %1674 = vpush %v396_v3 }
 0x36f   : > { %1676 = vpush %v388_v4 }
 0x39f   : > { %s1675_s21 = spop %1674 }
 0x3a0   : > { %s1677_s3 = spop %1676 }
 0x3a1   : > { %s399_s13 = smul.f32 1e-10, %s1677_s3 }
 0x3a3   : > { %p400_p7 = scmp.le.f32.partialorder %s1675_s21, %s399_s13 }
 0x3a5   : > { %p402_p8 = por %p401_p6, %p400_p7 }
 0x3a7   :  { %850 = sbr.rel (!%p402_p8) target bundleno = 263 (0x107), region = 446 }
 0x3ac PF:  { %s851_s14 = smov [#allocation12]  ;;  %v855_v10 = vmov %v2538_v10  ;;  %v858_v11 = vmov %v2540_v11  ;;  %s871_s15 = smov [#allocation15] }
 0x3ad   :  { %v875_v10 = vmov %v2538_v10  ;;  %v878_v11 = vmov %v2540_v11  ;;  %v859_v5 = vld [vmem:[%s851_s14] sm:$0xff]  ;;  %vm862_vm10 = vcmp.eq.s32.totalorder %v858_v11, %v855_v10  ;;  %s852_s0 = smov [#allocation4]  ;;  %s872_s16 = smov [#allocation6] }
 0x3ae   :  { %vm882_vm11 = vcmp.eq.s32.totalorder %v878_v11, %v875_v10  ;;  %v863_v6 = vsel %vm862_vm10, %v859_v5, 0.0  ;;  %v879_v7 = vld [vmem:[%s871_s15] sm:$0xff]  ;;  %s2429_s24 = smov %s2744_s6   ;;  %s2433_s25 = smov [#allocation8]  }
 0x3af   :  { %v864_v8 = vrot.slane %v863_v6, 4  ;;  %v883_v9 = vsel %vm882_vm11, %v879_v7, 0.0 }
 0x3b0   :  { %v884_v12 = vrot.slane %v883_v9, 4 }
 0x3b1   :  { %v865_v13 = vadd.f32 %v864_v8, %v863_v6 }
 0x3b2   :  { %v885_v14 = vadd.f32 %v884_v12, %v883_v9 }
 0x3b3   :  { %v866_v15 = vrot.slane %v865_v13, 2 }
 0x3b4   :  { %v886_v16 = vrot.slane %v885_v14, 2 }
 0x3b5   :  { %v867_v17 = vadd.f32 %v866_v15, %v865_v13 }
 0x3b6   :  { %v887_v18 = vadd.f32 %v886_v16, %v885_v14 }
 0x3b7   :  { %v868_v19 = vrot.slane %v867_v17, 1 }
 0x3b8   :  { %v888_v20 = vrot.slane %v887_v18, 1 }
 0x3b9   :  { %v869_v21 = vadd.f32 %v868_v19, %v867_v17 }
 0x3ba   :  { %v889_v22 = vadd.f32 %v888_v20, %v887_v18 }
 0x3bb   :  { %870 = vst [vmem:[%s852_s0] sm:$0x1] %v869_v21 }
 0x3bc   :  { %890 = vst [vmem:[%s872_s16] sm:$0x1] %v889_v22 }
 0x3c2   :  { %v895_v10 = vld [vmem:[#allocation4] sm:$0x1] }
 0x3c3   :  { %898 = vst [vmem:[#allocation5] sm:$0x1] %v895_v10  ;;  %v903_v11 = vld [vmem:[#allocation6] sm:$0x1] }
 0x3c4   :  { %906 = vst [vmem:[#allocation7] sm:$0x1] %v903_v11 }
 0x3ca   :  { %v970_v23 = vld [vmem:[#allocation5] sm:$0x1] }
 0x3cb   :  { %971 = vst [vmem:[%s2742_s4] sm:$0x1] %v970_v23  ;;  %v1035_v24 = vld [vmem:[#allocation7] sm:$0x1] }
 0x3cc   :  { %1036 = vst [vmem:[%s2743_s5] sm:$0x1] %v1035_v24 }
 0x3cd LB: > { %v1084_v25 = vld [vmem:[%s2435_s25] sm:$0xff]  ;;  %s1086_s25 = scalar_lea.vmem %s2435_s25, 8   ;;  %s2435_s25 = sphi %s2433_s25, %s1086_s25   ;;  %s2431_s24 = sphi %s2429_s24, %s1087_s24  }
 0x3ce   : > { %1085 = vst [vmem:[%s2431_s24] sm:$0xff] %v1084_v25  ;;  %s1087_s24 = scalar_lea.vmem %s2431_s24, 8   ;;  %p1081_p9 = scmp.gt.s32.totalorder %s1086_s25, [#allocation8] }
 0x3cf   :  { %s2437_s5 = smov (%p1081_p9), %s2745_s7   ;;  %s2441_s26 = smov (%p1081_p9), [#allocation9]  }
 0x3d0   :  { %1083 = sbr.rel (!%p1081_p9) target bundleno = 973 (0x3cd), region = 512 }
 0x3d5 LB: > { %v1147_v26 = vld [vmem:[%s2443_s26] sm:$0xff]  ;;  %s1149_s26 = scalar_lea.vmem %s2443_s26, 8   ;;  %s2443_s26 = sphi %s2441_s26, %s1149_s26   ;;  %s2439_s5 = sphi %s2437_s5, %s1150_s5  }
 0x3d6   : > { %1148 = vst [vmem:[%s2439_s5] sm:$0xff] %v1147_v26  ;;  %s1150_s5 = scalar_lea.vmem %s2439_s5, 8   ;;  %p1144_p10 = scmp.gt.s32.totalorder %s1149_s26, [#allocation9] }
 0x3d7   :  { %s2445_s28 = smov (%p1144_p10), %s2746_s8   ;;  %s2449_s29 = smov (%p1144_p10), [#allocation10]  }
 0x3d8   :  { %1146 = sbr.rel (!%p1144_p10) target bundleno = 981 (0x3d5), region = 534 }
 0x3dd LB: > { %v1210_v27 = vld [vmem:[%s2451_s29] sm:$0xff]  ;;  %s1212_s29 = scalar_lea.vmem %s2451_s29, 8   ;;  %s2451_s29 = sphi %s2449_s29, %s1212_s29   ;;  %s2447_s28 = sphi %s2445_s28, %s1213_s28  }
 0x3de   : > { %1211 = vst [vmem:[%s2447_s28] sm:$0xff] %v1210_v27  ;;  %s1213_s28 = scalar_lea.vmem %s2447_s28, 8   ;;  %p1207_p11 = scmp.gt.s32.totalorder %s1212_s29, [#allocation10] }
 0x3df   :  { %s2453_s2 = smov (%p1207_p11), %s2747_s9   ;;  %s2457_s10 = smov (%p1207_p11), [#allocation11]  }
 0x3e0   :  { %1209 = sbr.rel (!%p1207_p11) target bundleno = 989 (0x3dd), region = 556 }
 0x3e5 LB: > { %v1273_v28 = vld [vmem:[%s2459_s10] sm:$0xff]  ;;  %s1275_s10 = scalar_lea.vmem %s2459_s10, 8   ;;  %s2459_s10 = sphi %s2457_s10, %s1275_s10   ;;  %s2455_s2 = sphi %s2453_s2, %s1276_s2  }
 0x3e6   : > { %1274 = vst [vmem:[%s2455_s2] sm:$0xff] %v1273_v28  ;;  %s1276_s2 = scalar_lea.vmem %s2455_s2, 8   ;;  %p1270_p12 = scmp.gt.s32.totalorder %s1275_s10, [#allocation11] }
 0x3e8   :  { %1272 = sbr.rel (!%p1270_p12) target bundleno = 997 (0x3e5), region = 578 }

// kernel: reverse
= control target key start
LH: loop header
LB: loop body
LE: loop exit
PB: predicated region body
PF: predicated region fallthrough
CT: control target
= control target key end

     0   :  { %v2_v0 = vlaneseq  ;;  %s130_s0 = inlined_call_operand.vmem [shape: f32[16], index: 0, kind: input, shape index: {}]   ;;  %s131_s1 = inlined_call_operand.vmem [shape: f32[16], index: 1, kind: output, shape index: {}]  }
   0x2   :  { %v3_v1 = vsub.s32 15, %v2_v0 }
   0x4   :  { %4 = vset.pattern.permute.xlu0 %v3_v1 }
   0x5   :  { %v46_v2 = vld [vmem:[#allocation1] sm:$0x1]  ;;  %v22_v3 = vld [vmem:[%s130_s0] sm:$0x1]  ;;  %v61_v10 = vshrl.u32 %v2_v0, 7 }
   0x6   :  { %47 = vst [vmem:[#allocation0] sm:$0x1] %v46_v2  ;;  %23 = vst [vmem:[#allocation1 + $0x1] sm:$0x1] %v22_v3 }
   0x7   :  { %vm62_vm0 = vcmp.lt.s32.totalorder %v61_v10, 1 }
   0xd   :  { %v49_v4 = vld [vmem:[#allocation0 + $0x7] ss:$-1 sm:$0xff]  ;;  %v43_v5 = vld [vmem:[#allocation1 + $0x1] sm:$0x1] }
   0xe   :  { %v50_v6 = vrot.slane %v49_v4, 7  ;;  %45 = vst [vmem:[#allocation0 + $0x8] sm:$0x1] %v43_v5 }
  0x10   :  { %51 = vperm.xlu0 %4, %v50_v6  }
  0x15   :  { %v56_v7 = vld [vmem:[#allocation0 + $0xf] ss:$-1 sm:$0xff] }
  0x16   :  { %v57_v8 = vrot.slane %v56_v7, 7 }
  0x18   :  { %58 = vperm.xlu0 %4, %v57_v8  }
  0x8b   :  { %v52_v9 = vpop.permute.xlu0 %51 }
  0x8c   :  { %53 = vst [vmem:[#allocation2] sm:$0xff] %v52_v9 }
  0x93   :  { %v59_v11 = vpop.permute.xlu0 %58 }
  0x94   :  { %63 = vst.msk [vmem:[#allocation2] sm:$0xff] %vm62_vm0, %v59_v11 }
  0x9b   :  { %v68_v12 = vld [vmem:[#allocation2] sm:$0x1] }
  0x9c   :  { %71 = vst [vmem:[#allocation3] sm:$0x1] %v68_v12 }
  0xa3   :  { %v88_v13 = vld [vmem:[#allocation3] sm:$0x1] }
  0xa4   :  { %89 = vst [vmem:[%s131_s1] sm:$0x1] %v88_v13 }

// kernel: custom-call.10
= control target key start
LH: loop header
LB: loop body
LE: loop exit
PB: predicated region body
PF: predicated region fallthrough
CT: control target
= control target key end

     0   :  { %v401_v2 = vmov 0.0   ;;  %s424_s13 = smov 0   ;;  %s508_s0 = inlined_call_operand.vmem [shape: f32[16,16], index: 0, kind: input, shape index: {}]   ;;  %s509_s1 = inlined_call_operand.vmem [shape: f32[16,16], index: 1, kind: output, shape index: {0}]   ;;  %s510_s2 = inlined_call_operand.vmem [shape: f32[16], index: 2, kind: output, shape index: {1}]  }
   0x1   :  { %v34_v0 = vld [vmem:[%s508_s0] sm:$0xff]  ;;  %v36_v1 = vld [vmem:[%s508_s0 + $0x8] sm:$0xff]  ;;  %47 = vst [vmem:[#allocation2] sm:$0x1] %v401_v2 }
   0x2   :  { %42 = vst [vmem:[#allocation1] sm:$0xff] %v34_v0  ;;  %46 = vst [vmem:[#allocation1 + $0x8] sm:$0xff] %v36_v1 }
   0x3 LB: > { %v55_v3 = vlaneseq  ;;  %v433_v6 = vstv %s399_s13  ;;  %s92_s0 = scalar_lea.vmem [#allocation1], %s399_s13  ;;  %s128_s14 = smov [#allocation1]  ;;  %s399_s13 = sphi %s424_s13, %s53_s13  }
   0x4   : > { %s168_s15 = scalar_lea.vmem [#allocation4], %s399_s13  ;;  %s184_s16 = smov [#allocation1] }
   0x5   : > { %v430_v5 = vshrl.u32 %v55_v3, 7  ;;  %v459_v54 = vand.u32 127, %v55_v3  ;;  %s185_s17 = smov [#allocation4] }
   0x7   : > { %vm59_vm0 = vcmp.gt.s32.totalorder %v430_v5, %v433_v6  ;;  %v66_v8 = vadd.s32 8, %v430_v5  ;;  %v131_v5 = vmov %v430_v5  ;;  %vm463_vm12 = vcmp.eq.s32.totalorder %v459_v54, %v433_v6 }
   0x8   : > { %v150_v50 = vadd.s32 8, %v131_v5  ;;  %vm135_vm10 = vcmp.gt.s32.totalorder %v131_v5, %v433_v6  ;;  %v188_v5 = vmov %v430_v5 }
   0x9   : > { %v54_v4 = vld [vmem:[#allocation1] sm:$0xff]  ;;  %v63_v7 = vld [vmem:[#allocation1 + $0x8] sm:$0xff]  ;;  %vm68_vm1 = vcmp.gt.s32.totalorder %v66_v8, %v433_v6 }
   0xa   : > { %v60_v9 = vsel %vm59_vm0, %v54_v4, 0.0  ;;  %v71_v11 = vsel %vm68_vm1, %v63_v7, 0.0  ;;  %v93_v20 = vld [vmem:[%s92_s0] ss:$0 sm:$0xff]  ;;  %vm152_vm8 = vcmp.gt.s32.totalorder %v150_v50, %v433_v6  ;;  %vm153_vm9 = vcmp.lt.s32.totalorder %v150_v50, 16  ;;  %v367_v53 = vld [vmem:[%s128_s14 + $0x8] sm:$0xff] }
   0xb   : > { %v61_v10 = vmul.f32 %v60_v9, %v60_v9  ;;  %v72_v12 = vmul.f32 %v71_v11, %v71_v11  ;;  %v94_v21 = vand.u32 2147483647, %v93_v20  ;;  %vm119_vm7 = vcmp.lt.f32.partialorder %v93_v20, 0.0  ;;  %v132_v52 = vld [vmem:[%s128_s14] sm:$0xff]  ;;  %vm154_vm11 = vmand %vm152_vm8, %vm153_vm9  ;;  %v181_v7 = vld [vmem:[#allocation2] ss:$0 sm:$0xff] }
   0xc   : > { %v136_v56 = vsel %vm135_vm10, %v132_v52, 0.0  ;;  %v155_v57 = vsel %vm154_vm11, %v367_v53, 0.0  ;;  %vm221_vm0 = vcmp.gt.s32.totalorder %v459_v54, %v433_v6 }
   0xd   : > { %v73_v13 = vadd.f32 %v72_v12, %v61_v10  ;;  %v95_v26 = vmax.f32 %v94_v21, 0.0  ;;  %v402_v12 = vmov 1.0  }
   0xf   : > { %v74_v14 = vrot.slane %v73_v13, 4 }
  0x11   : > { %v75_v15 = vadd.f32 %v74_v14, %v73_v13  ;;  %v193_v13 = vadd.s32 8, %v188_v5  ;;  %v191_v14 = vld [vmem:[%s184_s16] sm:$0xff]  ;;  %v212_v5 = vmov %v430_v5 }
  0x12   : > { %vm229_vm14 = vcmp.ge.s32.totalorder %v212_v5, %v433_v6 }
  0x13   : > { %v76_v16 = vrot.slane %v75_v15, 2  ;;  %vm199_vm13 = vcmp.lt.s32.totalorder %v193_v13, 16  ;;  %vm230_vm1 = vmand %vm463_vm12, %vm229_vm14 }
  0x15   : > { %v77_v17 = vadd.f32 %v76_v16, %v75_v15  ;;  %v369_v15 = vld [vmem:[%s184_s16 + $0x8] sm:$0xff]  ;;  %s208_s16 = smov %s184_s16 }
  0x16   : > { %s254_s18 = scalar_lea.vmem %s208_s16, %s399_s13  ;;  %s53_s13 = sadd.s32 1, %s399_s13  }
  0x17   : > { %v78_v18 = vrot.slane %v77_v17, 1  ;;  %p50_p0 = scmp.ge.s32.totalorder %s53_s13, 16  }
  0x19   : > { %v439_v19 = vadd.f32 %v78_v18, %v77_v17 }
  0x1b   : > { %383 = vrsqrt.f32 %v439_v19  ;;  %vm82_vm2 = vcmp.eq.f32.partialorder %v439_v19, inf  ;;  %v85_v23 = vand.u32 2147483648, %v439_v19  ;;  %vm84_vm3 = vcmp.eq.f32.partialorder %v439_v19, 0.0 }
  0x28   : > { %v384_v22 = vpop.eup %383 }
  0x29   : > { %v81_v24 = vmul.f32 %v384_v22, %v439_v19 }
  0x2b   : > { %v83_v25 = vsel %vm82_vm2, %v439_v19, %v81_v24 }
  0x2c   : > { %v86_v27 = vsel %vm84_vm3, %v85_v23, %v83_v25 }
  0x2d   : > { %v96_v28 = vand.u32 2147483647, %v86_v27  ;;  %v233_v27 = vadd.s32 8, %v212_v5 }
  0x2f   : > { %v97_v29 = vmax.f32 %v95_v26, %v96_v28  ;;  %vm250_vm15 = vcmp.ge.s32.totalorder %v233_v27, %v433_v6 }
  0x30   : > { %vm251_vm2 = vmand %vm463_vm12, %vm250_vm15 }
  0x31   : > { %385 = vrcp.f32 %v97_v29  ;;  %vm109_vm6 = vcmp.eq.f32.partialorder %v97_v29, 0.0 }
  0x3e   : > { %v386_v30 = vpop.eup %385 }
  0x3f   : > { %v99_v31 = vmul.f32 %v386_v30, %v94_v21  ;;  %v102_v32 = vmul.f32 0.0, %v386_v30  ;;  %v106_v33 = vmul.f32 %v386_v30, %v96_v28 }
  0x41   : > { %v100_v34 = vmul.f32 %v99_v31, %v99_v31  ;;  %v103_v35 = vmul.f32 %v102_v32, %v102_v32  ;;  %v107_v36 = vmul.f32 %v106_v33, %v106_v33  ;;  %v371_v33 = vld [vmem:[%s208_s16 + $0x8] sm:$0xff] }
  0x43   : > { %v104_v37 = vadd.f32 %v103_v35, %v100_v34 }
  0x45   : > { %v108_v38 = vadd.f32 %v107_v36, %v104_v37 }
  0x47   : > { %387 = vrsqrt.f32 %v108_v38  ;;  %vm112_vm4 = vcmp.eq.f32.partialorder %v108_v38, inf  ;;  %v115_v40 = vand.u32 2147483648, %v108_v38  ;;  %vm114_vm5 = vcmp.eq.f32.partialorder %v108_v38, 0.0 }
  0x54   : > { %v388_v39 = vpop.eup %387 }
  0x55   : > { %v111_v41 = vmul.f32 %v388_v39, %v108_v38 }
  0x57   : > { %v113_v42 = vsel %vm112_vm4, %v108_v38, %v111_v41 }
  0x58   : > { %v116_v43 = vsel %vm114_vm5, %v115_v40, %v113_v42 }
  0x59   : > { %v117_v44 = vmul.f32 %v116_v43, %v97_v29  ;;  %v219_v29 = vld [vmem:[%s208_s16] sm:$0xff] }
  0x5b   : > { %v118_v45 = vsel %vm109_vm6, 0.0, %v117_v44 }
  0x5c   : > { %v120_v46 = vxor.u32 2147483648, %v118_v45 }
  0x5e   : > { %v121_v47 = vsel %vm119_vm7, %v118_v45, %v120_v46 }
  0x5f   : > { %v452_v48 = vsel %vm84_vm3, %v93_v20, %v121_v47  ;;  %389 = vrcp.f32 %v121_v47  ;;  %v122_v51 = vsub.f32 %v121_v47, %v93_v20 }
  0x60   : > { %v127_v49 = vsub.f32 %v93_v20, %v452_v48 }
  0x62   : > { %391 = vrcp.f32 %v127_v49 }
  0x6c   : > { %v390_v55 = vpop.eup %389 }
  0x6d   : > { %v124_v58 = vmul.f32 %v390_v55, %v122_v51 }
  0x6f   : > { %v392_v59 = vpop.eup %391  ;;  %v126_v61 = vsel %vm84_vm3, 0.0, %v124_v58 }
  0x70   : > { %v138_v62 = vmul.f32 %v392_v59, %v136_v56  ;;  %v157_v63 = vmul.f32 %v392_v59, %v155_v57  ;;  %v174_v0 = vsel %vm463_vm12, %v126_v61, 0.0 }
  0x71   : > { %175 = vadd.xlane.f32.xlu1 %v174_v0 }
  0x72   : > { %v139_v1 = vsel %vm84_vm3, 0.0, %v138_v62  ;;  %v158_v2 = vsel %vm84_vm3, 0.0, %v157_v63 }
  0x73   : > { %v144_v3 = vsel %vm463_vm12, %v139_v1, 0.0  ;;  %v163_v4 = vsel %vm463_vm12, %v158_v2, 0.0 }
  0x74   : > { %145 = vadd.xlane.f32.xlu0 %v144_v3 }
  0x78   : > { %164 = vadd.xlane.f32.xlu0 %v163_v4 }
  0xfa   : > { %v176_v8 = vpop.xlane.xlu1 %175 }
  0xfb   : > { %v182_v9 = vsel %vm463_vm12, %v176_v8, %v181_v7 }
  0xfc   : > { %183 = vst [vmem:[#allocation2] sm:$0x1] %v182_v9 }
  0xfd   : > { %v146_v10 = vpop.xlane.xlu0 %145 }
  0xfe   : > { %147 = vst [vmem:[#allocation4] sm:$0xff] %v146_v10 }
 0x101   : > { %v165_v11 = vpop.xlane.xlu0 %164 }
 0x102   : > { %167 = vst [vmem:[#allocation4 + $0x8] sm:$0xff] %v165_v11 }
 0x103   : > { %169 = vst [vmem:[%s168_s15] sm:$0x1] %v402_v12  ;;  %v266_v42 = vld [vmem:[#allocation2] sm:$0x1] (%p50_p0) }
 0x104   :  { %269 = vst [vmem:[#allocation3] sm:$0x1] (%p50_p0), %v266_v42 }
 0x10a   : > { %v190_v16 = vld [vmem:[%s185_s17] sm:$0xff]  ;;  %v368_v17 = vld [vmem:[%s185_s17 + $0x8] sm:$0xff]  ;;  %s209_s17 = smov %s185_s17 }
 0x10b   : > { %v192_v18 = vmul.f32 %v191_v14, %v190_v16  ;;  %v198_v19 = vmul.f32 %v369_v15, %v368_v17  ;;  %v217_v31 = vld [vmem:[%s209_s17] sm:$0xff]  ;;  %v370_v32 = vld [vmem:[%s209_s17 + $0x8] sm:$0xff]  ;;  %v325_v45 = vld [vmem:[#allocation3] sm:$0x1] (%p50_p0) }
 0x10c   :  { %326 = vst [vmem:[%s510_s2] sm:$0x1] (%p50_p0), %v325_v45 }
 0x10d   : > { %v200_v20 = vsel %vm199_vm13, %v198_v19, 0.0 }
 0x10e   : > { %v201_v21 = vadd.f32 %v200_v20, %v192_v18 }
 0x110   : > { %v202_v22 = vrot.slane %v201_v21, 4 }
 0x112   : > { %v203_v23 = vadd.f32 %v202_v22, %v201_v21 }
 0x114   : > { %v204_v24 = vrot.slane %v203_v23, 2 }
 0x116   : > { %v205_v25 = vadd.f32 %v204_v24, %v203_v23 }
 0x118   : > { %v206_v26 = vrot.slane %v205_v25, 1 }
 0x11a   : > { %v207_v28 = vadd.f32 %v206_v26, %v205_v25 }
 0x11c   : > { %v213_v30 = vmul.f32 %v207_v28, %v176_v8 }
 0x11e   : > { %v218_v34 = vmul.f32 %v217_v31, %v213_v30  ;;  %v238_v35 = vmul.f32 %v370_v32, %v213_v30 }
 0x120   : > { %v222_v36 = vsub.f32 %v219_v29, %v218_v34  ;;  %v243_v5 = vsub.f32 %v371_v33, %v238_v35 }
 0x122   : > { %v223_v37 = vsel %vm221_vm0, %v222_v36, %v219_v29  ;;  %v244_v38 = vsel %vm221_vm0, %v243_v5, %v371_v33 }
 0x123   : > { %v231_v39 = vsel %vm230_vm1, %v217_v31, %v223_v37  ;;  %v252_v40 = vsel %vm251_vm2, %v370_v32, %v244_v38 }
 0x124   : > { %232 = vst [vmem:[%s208_s16] sm:$0xff] %v231_v39  ;;  %372 = vst [vmem:[%s208_s16 + $0x8] sm:$0xff] %v252_v40 }
 0x129   :  { %52 = sbr.rel (!%p50_p0) target bundleno = 3 (0x3), region = 148 }
 0x12b   : > { %v255_v41 = vld [vmem:[%s254_s18] ss:$0 sm:$0xff] }
 0x12c   : > { %v260_v6 = vsel %vm463_vm12, %v452_v48, %v255_v41 }
 0x12d   : > { %261 = vst [vmem:[%s254_s18] sm:$0x1] %v260_v6 }
 0x134   :  { %v300_v43 = vld [vmem:[#allocation1] sm:$0xff]  ;;  %v302_v44 = vld [vmem:[#allocation1 + $0x8] sm:$0xff] }
 0x135   :  { %301 = vst [vmem:[%s509_s1] sm:$0xff] %v300_v43  ;;  %303 = vst [vmem:[%s509_s1 + $0x8] sm:$0xff] %v302_v44 }

// kernel: svd_pca_noise.1
= control target key start
LH: loop header
LB: loop body
LE: loop exit
PB: predicated region body
PF: predicated region fallthrough
CT: control target
= control target key end

     0   :  { %10 = vsyncpa [#allocation3], 0  ;;  %v269_v1 = vmov 0.0   ;;  %vm270_vm0 = vmmov 0   ;;  %s339_s0 = inlined_call_operand.vmem [shape: f32[16,128], index: 0, kind: input, shape index: {}]   ;;  %s340_s1 = inlined_call_operand.vmem [shape: bf16[16,128], index: 1, kind: input, shape index: {}]   ;;  %s341_s2 = inlined_call_operand.vmem [shape: bf16[128,128], index: 2, kind: input, shape index: {}]   ;;  %s342_s3 = inlined_call_operand.hbm [shape: f32[16,128], index: 3, kind: output, shape index: {0}]   ;;  %s343_s4 = inlined_call_operand.hbm [shape: f32[16,128], index: 4, kind: output, shape index: {1}]  }
   0x1   :  { %v216_v0 = vld [vmem:[%s341_s2 + $0x38] sm:$0xff]   ;;  %190 = vmatprep.subr.bf16.mxu0 %v269_v1  ;;  %v217_v2 = vld [vmem:[%s341_s2 + $0x30] sm:$0xff]   ;;  %206 = vmatprep.mubr.msk.bf16.mxu0 %vm270_vm0, %v269_v1  ;;  %v218_v3 = vld [vmem:[%s341_s2 + $0x28] sm:$0xff]  }
   0x2   :  { %191 = vmatpush3.bf16.msra.mxu0 %v216_v0 }
   0x3   :  { %192 = vmatprep.subr.bf16.mxu0 %v269_v1 }
   0x6   :  { %193 = vmatpush3.bf16.msra.mxu0 %v217_v2 }
   0x7   :  { %194 = vmatprep.subr.bf16.mxu0 %v269_v1 }
   0x8   :  { %11 = vsyncpa [#allocation5], 0  ;;  %v219_v4 = vld [vmem:[%s341_s2 + $0x20] sm:$0xff]   ;;  %v220_v5 = vld [vmem:[%s341_s2 + $0x18] sm:$0xff]   ;;  %s271_s9 = smov [#allocation4]  }
   0x9   :  { %v221_v6 = vld [vmem:[%s341_s2 + $0x10] sm:$0xff]   ;;  %v222_v7 = vld [vmem:[%s341_s2 + $0x8] sm:$0xff]   ;;  %v223_v8 = vld [vmem:[%s341_s2] sm:$0xff]   ;;  %s157_s10 = sshll.u32 %s271_s9, 4  ;;  %s272_s2 = smov [#allocation2]   ;;  %s158_s10 = int_to_ptr.vmem [resolvable:$true] %s157_s10 }
   0xa   :  { %195 = vmatpush3.bf16.msra.mxu0 %v218_v3  ;;  %v224_v9 = vld [vmem:[%s340_s1] sm:$0xff]   ;;  %v133_v14 = vld [vmem:[%s339_s0 + $0x8] sm:$0xff]  ;;  %s145_s13 = sshll.u32 %s272_s2, 4  ;;  %s225_s1 = scalar_lea.vmem %s158_s10, 256  ;;  %s146_s13 = int_to_ptr.vmem [resolvable:$true] %s145_s13 }
   0xb   :  { %196 = vmatprep.subr.bf16.mxu0 %v269_v1  ;;  %v132_v10 = vld [vmem:[%s339_s0] sm:$0xff]  ;;  %p226_p0 = scmp.ne.s32.totalorder %s158_s10, %s225_s1  ;;  %p230_p1 = scmp.lt.s32.totalorder %s158_s10, %s158_s10 }
   0xc   :  { %p231_p2 = scmp.lt.s32.totalorder %s225_s1, %s225_s1 }
   0xe   :  { %197 = vmatpush3.bf16.msra.mxu0 %v219_v4  ;;  %p232_p3 = por %p231_p2, %p230_p1 }
   0xf   :  { %198 = vmatprep.subr.bf16.mxu0 %v269_v1 }
  0x10   :  { %p233_p4 = pnand %p232_p3, %p226_p0 }
  0x12   :  { %199 = vmatpush3.bf16.msra.mxu0 %v220_v5 }
  0x13   :  { %200 = vmatprep.subr.bf16.mxu0 %v269_v1 }
  0x16   :  { %201 = vmatpush3.bf16.msra.mxu0 %v221_v6 }
  0x17   :  { %202 = vmatprep.subr.bf16.mxu0 %v269_v1 }
  0x1a   :  { %203 = vmatpush3.bf16.msra.mxu0 %v222_v7 }
  0x1b   :  { %204 = vmatprep.subr.bf16.mxu0 %v269_v1 }
  0x1e   :  { %205 = vmatpush3.bf16.msra.mxu0 %v223_v8 }
  0x21   :  { %207 = vmatmul.mubr.bf16.vlgmr.msra.gmra.mxu0 %v224_v9 }
  0xe1   :  { %v125_v11 = vpop.f32.mrf.mxu0 }
  0xe2   :  { %v134_v12 = vadd.f32 %v132_v10, %v125_v11  ;;  %138 = vst [vmem:[#allocation4] sm:$0xff] %v125_v11 }
  0xe3   :  { %v208_v13 = vpop.f32.mrf.mxu0 }
  0xe4   :  { %136 = vst [vmem:[#allocation2] sm:$0xff] %v134_v12 }
  0xe5   :  { %v128_v15 = vpop.f32.mrf.mxu0 }
  0xe6   :  { %v135_v16 = vadd.f32 %v133_v14, %v128_v15  ;;  %139 = vst [vmem:[#allocation4 + $0x8] sm:$0xff] %v128_v15 }
  0xe7   :  { %v209_v17 = vpop.f32.mrf.mxu0 }
  0xe8   :  { %236 = shalt.err (!%p233_p4)
}
  0xe9   :  { %s273_s14 = smov 128   ;;  %s274_s15 = smov 8   ;;  %137 = vst [vmem:[#allocation2 + $0x8] sm:$0xff] %v135_v16 }
  0xea   :  { %163 = dma.vmem_to_hbm [thread:$0]  %s158_s10, 256, %s343_s4, [#allocation5], %s273_s14, %s273_s14, %s274_s15  }
  0xeb   :  { %s245_s17 = scalar_lea.vmem %s146_s13, 256  ;;  %p250_p6 = scmp.lt.s32.totalorder %s146_s13, %s146_s13 }
  0xec   :  { %p246_p5 = scmp.ne.s32.totalorder %s146_s13, %s245_s17  ;;  %p251_p7 = scmp.lt.s32.totalorder %s245_s17, %s245_s17 }
  0xee   :  { %p252_p8 = por %p251_p7, %p250_p6 }
  0xf0   :  { %p253_p9 = pnand %p252_p8, %p246_p5 }
  0xf2   :  { %256 = shalt.err (!%p253_p9)
}
  0xf3   :  { %151 = dma.vmem_to_hbm [thread:$0]  %s146_s13, 256, %s342_s3, [#allocation3], %s273_s14, %s273_s14, %s274_s15  }
  0xf4   :  { %265 = dma.done.wait [#allocation3], 256  }
  0xf5   :  { %266 = vsyncadd [#allocation3], 4294967040 }
  0xf6   :  { %267 = dma.done.wait [#allocation5], 256  }
  0xf7   :  { %268 = vsyncadd [#allocation5], 4294967040 }
  0xf8   :  { %170 = vsyncpa [#allocation3], 1 }
  0xf9   :  { %171 = vsyncpa [#allocation5], 1 }

</bundles_post_ra>
